<compile_context>
chip_gen: v5e
topology: v5e:2x2
jax: 0.10.0
libtpu: 0.0.40
codegen_flags: <defaults>
</compile_context>

<pallas_src>
import functools
import math

import jax
import jax.numpy as jnp
import numpy as np
from jax import lax
from jax.experimental import pallas as pl
from jax.experimental.pallas import tpu as pltpu


def _round_up(x, m):
    return ((x + m - 1) // m) * m


def _pad_in_features(in_f):
    """Pad in_features to a divisor of 128 (or a multiple of 128 if large)."""
    if in_f <= 128:
        pad = 1
        while pad < in_f:
            pad *= 2
        return pad                      # power of two <= 128, divides 128
    return _round_up(in_f, 128)


# ----------------------------- Pallas kernel ------------------------------- #
def _kan_kernel(x_ref, param_ref, w_ref, out_ref, feat_ref, *,
                spline_order, g2, chunk):
    """One row-tile of the fused KANLinear forward.

    x_ref:     (TR, W)            f32  packed input, W = P * in_f_pad.
    param_ref: (G2 + n_inv, W)    f32  rows 0..G2-1: knots (lane-tiled);
                                       rows G2..: precomputed 1/(g[j+k]-g[j]).
    w_ref:     ((C+1)*W, P*OUTP)  bf16 fused block-diagonal weights.
    out_ref:   (TR, P*OUTP)       f32  packed output.
    feat_ref:  (TR, (C+1)*W)      bf16 scratch: [silu | B_0 | ... | B_{C-1}].
    """
    tr, w = x_ref.shape
    assert feat_ref.shape[1] == w_ref.shape[0]
    n_chunks = tr // chunk

    # Knot rows and precomputed reciprocals, hoisted once per tile.
    params = param_ref[...]
    g_rows = [params[j:j + 1, :] for j in range(g2)]
    inv_rows = {}
    r = g2
    for k in range(1, spline_order + 1):
        for j in range(g2 - k):
            inv_rows[(k, j)] = params[r:r + 1, :]
            r += 1

    def chunk_body(c, carry):
        r0 = pl.multiple_of(c * chunk, chunk)
        x = x_ref[pl.ds(r0, chunk), :]                       # (chunk, W) f32

        # SiLU base activation -> feat column block 0.
        silu = x * (1.0 / (1.0 + jnp.exp(-x)))
        feat_ref[pl.ds(r0, chunk), pl.ds(0, w)] = silu.astype(jnp.bfloat16)

        # Degree-0 bases: one compare per knot; for a monotone knot vector
        # indicator(g[j] <= x < g[j+1]) == cmp_j - cmp_{j+1}.
        cmp_prev = (x >= g_rows[0]).astype(x.dtype)
        bases = []
        for j in range(g2 - 1):
            cmp_next = (x >= g_rows[j + 1]).astype(x.dtype)
            bases.append(cmp_prev - cmp_next)
            cmp_prev = cmp_next

        # dx_j = x - g[j], reused across all recursion levels.
        dxs = [x - g_rows[j] for j in range(g2 - 1)]

        # Cox-de Boor recursion. Right factor == 1 - left factor at j+1, so a
        # single t = dx * inv product per (k, j) suffices; updates are done in
        # place so old bases die as soon as they are consumed.
        for k in range(1, spline_order + 1):
            nb = g2 - 1 - k
            t_cur = dxs[0] * inv_rows[(k, 0)]
            for j in range(nb):
                t_next = dxs[j + 1] * inv_rows[(k, j + 1)]
                bases[j] = t_cur * bases[j] + (1.0 - t_next) * bases[j + 1]
                t_cur = t_next
            bases = bases[:nb]

        # Store B-spline bases into feat column blocks 1..C.
        for ci in range(len(bases)):
            feat_ref[pl.ds(r0, chunk), pl.ds((ci + 1) * w, w)] = (
                bases[ci].astype(jnp.bfloat16))
        return carry

    lax.fori_loop(0, n_chunks, chunk_body, 0, unroll=True)

    # Single fused MXU contraction, bf16 inputs with f32 accumulation.
    out_ref[...] = jnp.dot(
        feat_ref[...], w_ref[...], preferred_element_type=jnp.float32
    ).astype(out_ref.dtype)


# ------------------------ parameter preparation (hoisted) ------------------- #
def prepare_kan_params(grid, base_weight, spline_weight, spline_scaler,
                       spline_selector, *, spline_order):
    """Fold selector/scaler into the weights, precompute Cox-de Boor
    reciprocals, pad/pack everything for the TPU kernel.

    Call once per parameter update. Returns (param_rows, w_fused, out_features).
    """
    out_f, in_f = base_weight.shape
    n_coef = spline_weight.shape[-1]
    g2 = grid.shape[-1]
    assert g2 == n_coef + spline_order + 1

    in_f_pad = _pad_in_features(in_f)
    p = max(1, 128 // in_f_pad)
    w_lanes = p * in_f_pad
    out_pad = _round_up(out_f, max(1, 128 // p))   # => P*out_pad % 128 == 0

    # Knot vector, transposed and lane-tiled; padded input features get an
    # edge-replicated (still monotone) grid so all reciprocals stay finite.
    grid_f = grid.astype(jnp.float32)
    grid_f = jnp.pad(grid_f, ((0, in_f_pad - in_f), (0, 0)), mode='edge')
    grid_rows = jnp.tile(jnp.transpose(grid_f, (1, 0)), (1, p))        # (G2, W)

    # Precomputed x-independent Cox-de Boor reciprocals, appended as rows.
    inv_rows = []
    for k in range(1, spline_order + 1):
        for j in range(g2 - k):
            inv_rows.append(1.0 / (grid_rows[j + k] - grid_rows[j]))
    if inv_rows:
        param_rows = jnp.concatenate(
            [grid_rows, jnp.stack(inv_rows, axis=0)], axis=0)
    else:
        param_rows = grid_rows

    # Fold selector / scaler into the weights.
    sel = spline_selector.astype(jnp.float32)
    w_base = jnp.transpose(sel * base_weight, (1, 0))[None, :, :]      # (1,I,O)
    w_spl = jnp.transpose(
        spline_weight * (spline_scaler * sel)[:, :, None], (2, 1, 0))  # (C,I,O)
    w_eff = jnp.concatenate([w_base, w_spl], axis=0).astype(jnp.float32)
    w_eff = jnp.pad(w_eff, ((0, 0), (0, in_f_pad - in_f),
                            (0, out_pad - out_f)))                     # (C+1,Ip,Op)

    # Block-diagonal expansion over the packing factor so one matmul handles
    # all P packed samples: W[c*W + q*Ip + i, q*Op + o] = w_eff[c, i, o].
    eye = jnp.eye(p, dtype=jnp.float32)
    w_fused = jnp.einsum('cio,pq->cpiqo', w_eff, eye)
    w_fused = w_fused.reshape((n_coef + 1) * w_lanes, p * out_pad)
    return param_rows, w_fused.astype(jnp.bfloat16), out_f


# ------------------------------ JAX wrapper -------------------------------- #
@functools.partial(jax.jit,
                   static_argnames=("out_features", "spline_order", "tile_rows"))
def kan_linear_forward(x, param_rows, w_fused, *, out_features, spline_order,
                       tile_rows=256):
    """Pallas implementation of KANLinear.forward (quantize=False)."""
    in_f = x.shape[-1]
    in_f_pad = _pad_in_features(in_f)
    p = max(1, 128 // in_f_pad)
    w_lanes = p * in_f_pad
    k_dim, n_dim = w_fused.shape                     # ((C+1)*W, P*out_pad)
    out_pad = n_dim // p

    # Recover knot-row count from the parameter block layout.
    total_rows = param_rows.shape[0]
    g2 = (total_rows + spline_order * (spline_order + 1) // 2) // (spline_order + 1)
    assert (spline_order + 1) * g2 - spline_order * (spline_order + 1) // 2 == total_rows
    n_coef = g2 - 1 - spline_order
    assert k_dim == (n_coef + 1) * w_lanes

    orig_shape = x.shape
    x2d = x.reshape(-1, in_f).astype(jnp.float32)
    n_rows = x2d.shape[0]
    n_pack = -(-n_rows // p)                         # packed rows of real data

    # Tile sizing (packed rows per grid step):
    #  * multiple of 16 -> full bf16 (16,128) tiles in the feat scratch
    #  * >= 2 grid steps when there is enough work (v7x megacore)
    #  * capped so per-step VMEM stays well under v7x's 64 MiB budget
    tr = max(16, (tile_rows // 16) * 16)
    tr = min(tr, 512)
    n_pack_16 = _round_up(max(n_pack, 1), 16)
    if n_pack_16 >= 32:
        tr = min(tr, _round_up(n_pack_16 // 2, 16))
    else:
        tr = min(tr, n_pack_16)
    chunk = 16 if tr % 16 == 0 else 8
    n_pack_pad = _round_up(max(n_pack, 1), tr)
    n_rows_pad = n_pack_pad * p

    # Pad rows and (if needed) input features, then lane-pack P rows per slab.
    x_pad = jnp.pad(x2d, ((0, n_rows_pad - n_rows), (0, in_f_pad - in_f)))
    x_packed = x_pad.reshape(n_pack_pad, w_lanes)

    grid_steps = n_pack_pad // tr
    cost = pl.CostEstimate(
        # Count only the non-zero 1/P of the block-diagonal weight slab.
        flops=2 * n_pack_pad * (n_coef + 1) * in_f_pad * n_dim,
        transcendentals=n_pack_pad * w_lanes,
        bytes_accessed=4 * (x_packed.size + param_rows.size
                            + n_pack_pad * n_dim) + 2 * w_fused.size,
    )

    out_packed = pl.pallas_call(
        functools.partial(_kan_kernel, spline_order=spline_order, g2=g2,
                          chunk=chunk),
        out_shape=jax.ShapeDtypeStruct((n_pack_pad, n_dim), jnp.float32),
        grid_spec=pltpu.PrefetchScalarGridSpec(
            num_scalar_prefetch=0,
            grid=(grid_steps,),
            in_specs=[
                pl.BlockSpec((tr, w_lanes), lambda i: (i, 0)),
                pl.BlockSpec(param_rows.shape, lambda i: (0, 0)),  # resident
                pl.BlockSpec(w_fused.shape, lambda i: (0, 0)),     # resident
            ],
            out_specs=pl.BlockSpec((tr, n_dim), lambda i: (i, 0)),
            scratch_shapes=[pltpu.VMEM((tr, k_dim), jnp.bfloat16)],
        ),
        compiler_params=pltpu.CompilerParams(
            dimension_semantics=("parallel",)),
        cost_estimate=cost,
    )(x_packed, param_rows, w_fused)

    out2d = out_packed.reshape(n_rows_pad, out_pad)[:n_rows, :out_features]
    return out2d.reshape(*orig_shape[:-1], out_features)


# --------------------- pure-JAX reference (torch mirror) -------------------- #
def _ref_forward(x, grid, base_weight, spline_weight, spline_scaler,
                 spline_selector, *, spline_order):
    out_f, in_f = base_weight.shape
    orig_shape = x.shape
    x2 = x.reshape(-1, in_f)
    silu = x2 * jax.nn.sigmoid(x2)
    base_output = silu[:, :, None] * base_weight.T[None, :, :]

    xk = x2[:, :, None]
    bases = ((xk >= grid[None, :, :-1]) & (xk < grid[None, :, 1:])).astype(x2.dtype)
    for k in range(1, spline_order + 1):
        bases = ((xk - grid[None, :, :-(k + 1)])
                 / (grid[None, :, k:-1] - grid[None, :, :-(k + 1)]) * bases[:, :, :-1]
                 + (grid[None, :, k + 1:] - xk)
                 / (grid[None, :, k + 1:] - grid[None, :, 1:-k]) * bases[:, :, 1:])

    scaled = spline_weight * spline_scaler[:, :, None]
    spline_output = base_output + jnp.sum(
        bases[:, :, None, :] * jnp.transpose(scaled, (1, 0, 2))[None, :, :, :], axis=-1)
    spline_output = jnp.transpose(spline_output, (0, 2, 1))
    spline_output = spline_selector[None, :, :] * spline_output
    out = jnp.sum(spline_output, axis=-1)
    return out.reshape(*orig_shape[:-1], out_f)


# ----------------------------------- main ----------------------------------- #
if __name__ == "__main__":
    # Module hyper-parameters (KANLinear defaults).
    in_features = 32
    out_features = 16
    grid_size = 5
    spline_order = 3
    grid_range = (-1.0, 1.0)
    n_coef = grid_size + spline_order

    key = jax.random.PRNGKey(0)
    k_bw, k_sw, k_sc, k_x = jax.random.split(key, 4)

    h = (grid_range[1] - grid_range[0]) / grid_size
    grid_1d = (jnp.arange(-spline_order, grid_size + spline_order + 1,
                          dtype=jnp.float32) * h + grid_range[0])
    grid = jnp.broadcast_to(grid_1d[None, :],
                            (in_features, grid_1d.shape[0]))           # (IN, G2)

    bound = 1.0 / math.sqrt(in_features)
    base_weight = jax.random.uniform(k_bw, (out_features, in_features),
                                     minval=-bound, maxval=bound,
                                     dtype=jnp.float32)
    spline_weight = jax.random.uniform(
        k_sw, (out_features, in_features, n_coef),
        minval=-0.1, maxval=0.1, dtype=jnp.float32)
    spline_scaler = jax.random.uniform(k_sc, (out_features, in_features),
                                       minval=-bound, maxval=bound,
                                       dtype=jnp.float32)
    spline_selector = jnp.ones((out_features, in_features), dtype=jnp.float32)

    # Example input: (batch=2, seq=8, in_features=32), values inside grid range.
    x = jax.random.uniform(k_x, (2, 8, in_features),
                           minval=-0.95, maxval=0.95, dtype=jnp.float32)

    # One-time parameter preparation (hoisted out of the per-call path).
    param_rows, w_fused, out_f = prepare_kan_params(
        grid, base_weight, spline_weight, spline_scaler, spline_selector,
        spline_order=spline_order)

    out = kan_linear_forward(x, param_rows, w_fused,
                             out_features=out_f, spline_order=spline_order)
    out = jax.block_until_ready(out)

    ref = _ref_forward(x, grid, base_weight, spline_weight,
                       spline_scaler, spline_selector,
                       spline_order=spline_order)
    ref = jax.block_until_ready(ref)

    assert out.shape == (2, 8, out_features), out.shape
    # bf16-input / f32-accumulate MXU path vs pure-f32 reference.
    np.testing.assert_allclose(np.asarray(out), np.asarray(ref),
                               rtol=2e-2, atol=1e-2)
    print("KERNEL_OK")
</pallas_src>

<mosaic_0001>
module attributes {stable_mosaic.version = 11 : i64} {
  func.func @_kan_kernel(%arg0: i32, %arg1: memref<16x128xf32, #tpu.memory_space<vmem>>, %arg2: memref<42x128xf32, #tpu.memory_space<vmem>>, %arg3: memref<1152x128xbf16, #tpu.memory_space<vmem>>, %arg4: memref<16x128xf32, #tpu.memory_space<vmem>>, %arg5: memref<16x1152xbf16, #tpu.memory_space<vmem>>) attributes {dimension_semantics = [#tpu.dimension_semantics<parallel>], iteration_bounds = array<i64: 1>, scalar_prefetch = 0 : i64, scratch_operands = 1 : i64, tpu.core_type = #tpu.core_type<tc>, window_params = [{transform_indices = @transform_0, window_bounds = array<i64: 16, 128>}, {pipeline_mode = #tpu.pipeline_mode<synchronous>, transform_indices = @transform_1, window_bounds = array<i64: 42, 128>}, {pipeline_mode = #tpu.pipeline_mode<synchronous>, transform_indices = @transform_2, window_bounds = array<i64: 1152, 128>}, {transform_indices = @transform_3, window_bounds = array<i64: 16, 128>}]} {
    %c0 = arith.constant 0 : index
    %c0_0 = arith.constant 0 : index
    %0 = vector.load %arg2[%c0, %c0_0] : memref<42x128xf32, #tpu.memory_space<vmem>>, vector<42x128xf32>
    %1 = vector.extract_strided_slice %0 {offsets = [0, 0], sizes = [1, 128], strides = [1, 1]} : vector<42x128xf32> to vector<1x128xf32>
    %2 = vector.extract_strided_slice %0 {offsets = [1, 0], sizes = [1, 128], strides = [1, 1]} : vector<42x128xf32> to vector<1x128xf32>
    %3 = vector.extract_strided_slice %0 {offsets = [2, 0], sizes = [1, 128], strides = [1, 1]} : vector<42x128xf32> to vector<1x128xf32>
    %4 = vector.extract_strided_slice %0 {offsets = [3, 0], sizes = [1, 128], strides = [1, 1]} : vector<42x128xf32> to vector<1x128xf32>
    %5 = vector.extract_strided_slice %0 {offsets = [4, 0], sizes = [1, 128], strides = [1, 1]} : vector<42x128xf32> to vector<1x128xf32>
    %6 = vector.extract_strided_slice %0 {offsets = [5, 0], sizes = [1, 128], strides = [1, 1]} : vector<42x128xf32> to vector<1x128xf32>
    %7 = vector.extract_strided_slice %0 {offsets = [6, 0], sizes = [1, 128], strides = [1, 1]} : vector<42x128xf32> to vector<1x128xf32>
    %8 = vector.extract_strided_slice %0 {offsets = [7, 0], sizes = [1, 128], strides = [1, 1]} : vector<42x128xf32> to vector<1x128xf32>
    %9 = vector.extract_strided_slice %0 {offsets = [8, 0], sizes = [1, 128], strides = [1, 1]} : vector<42x128xf32> to vector<1x128xf32>
    %10 = vector.extract_strided_slice %0 {offsets = [9, 0], sizes = [1, 128], strides = [1, 1]} : vector<42x128xf32> to vector<1x128xf32>
    %11 = vector.extract_strided_slice %0 {offsets = [10, 0], sizes = [1, 128], strides = [1, 1]} : vector<42x128xf32> to vector<1x128xf32>
    %12 = vector.extract_strided_slice %0 {offsets = [11, 0], sizes = [1, 128], strides = [1, 1]} : vector<42x128xf32> to vector<1x128xf32>
    %13 = vector.extract_strided_slice %0 {offsets = [12, 0], sizes = [1, 128], strides = [1, 1]} : vector<42x128xf32> to vector<1x128xf32>
    %14 = vector.extract_strided_slice %0 {offsets = [13, 0], sizes = [1, 128], strides = [1, 1]} : vector<42x128xf32> to vector<1x128xf32>
    %15 = vector.extract_strided_slice %0 {offsets = [14, 0], sizes = [1, 128], strides = [1, 1]} : vector<42x128xf32> to vector<1x128xf32>
    %16 = vector.extract_strided_slice %0 {offsets = [15, 0], sizes = [1, 128], strides = [1, 1]} : vector<42x128xf32> to vector<1x128xf32>
    %17 = vector.extract_strided_slice %0 {offsets = [16, 0], sizes = [1, 128], strides = [1, 1]} : vector<42x128xf32> to vector<1x128xf32>
    %18 = vector.extract_strided_slice %0 {offsets = [17, 0], sizes = [1, 128], strides = [1, 1]} : vector<42x128xf32> to vector<1x128xf32>
    %19 = vector.extract_strided_slice %0 {offsets = [18, 0], sizes = [1, 128], strides = [1, 1]} : vector<42x128xf32> to vector<1x128xf32>
    %20 = vector.extract_strided_slice %0 {offsets = [19, 0], sizes = [1, 128], strides = [1, 1]} : vector<42x128xf32> to vector<1x128xf32>
    %21 = vector.extract_strided_slice %0 {offsets = [20, 0], sizes = [1, 128], strides = [1, 1]} : vector<42x128xf32> to vector<1x128xf32>
    %22 = vector.extract_strided_slice %0 {offsets = [21, 0], sizes = [1, 128], strides = [1, 1]} : vector<42x128xf32> to vector<1x128xf32>
    %23 = vector.extract_strided_slice %0 {offsets = [22, 0], sizes = [1, 128], strides = [1, 1]} : vector<42x128xf32> to vector<1x128xf32>
    %24 = vector.extract_strided_slice %0 {offsets = [23, 0], sizes = [1, 128], strides = [1, 1]} : vector<42x128xf32> to vector<1x128xf32>
    %25 = vector.extract_strided_slice %0 {offsets = [24, 0], sizes = [1, 128], strides = [1, 1]} : vector<42x128xf32> to vector<1x128xf32>
    %26 = vector.extract_strided_slice %0 {offsets = [25, 0], sizes = [1, 128], strides = [1, 1]} : vector<42x128xf32> to vector<1x128xf32>
    %27 = vector.extract_strided_slice %0 {offsets = [26, 0], sizes = [1, 128], strides = [1, 1]} : vector<42x128xf32> to vector<1x128xf32>
    %28 = vector.extract_strided_slice %0 {offsets = [27, 0], sizes = [1, 128], strides = [1, 1]} : vector<42x128xf32> to vector<1x128xf32>
    %29 = vector.extract_strided_slice %0 {offsets = [28, 0], sizes = [1, 128], strides = [1, 1]} : vector<42x128xf32> to vector<1x128xf32>
    %30 = vector.extract_strided_slice %0 {offsets = [29, 0], sizes = [1, 128], strides = [1, 1]} : vector<42x128xf32> to vector<1x128xf32>
    %31 = vector.extract_strided_slice %0 {offsets = [30, 0], sizes = [1, 128], strides = [1, 1]} : vector<42x128xf32> to vector<1x128xf32>
    %32 = vector.extract_strided_slice %0 {offsets = [31, 0], sizes = [1, 128], strides = [1, 1]} : vector<42x128xf32> to vector<1x128xf32>
    %33 = vector.extract_strided_slice %0 {offsets = [32, 0], sizes = [1, 128], strides = [1, 1]} : vector<42x128xf32> to vector<1x128xf32>
    %34 = vector.extract_strided_slice %0 {offsets = [33, 0], sizes = [1, 128], strides = [1, 1]} : vector<42x128xf32> to vector<1x128xf32>
    %35 = vector.extract_strided_slice %0 {offsets = [34, 0], sizes = [1, 128], strides = [1, 1]} : vector<42x128xf32> to vector<1x128xf32>
    %36 = vector.extract_strided_slice %0 {offsets = [35, 0], sizes = [1, 128], strides = [1, 1]} : vector<42x128xf32> to vector<1x128xf32>
    %37 = vector.extract_strided_slice %0 {offsets = [36, 0], sizes = [1, 128], strides = [1, 1]} : vector<42x128xf32> to vector<1x128xf32>
    %38 = vector.extract_strided_slice %0 {offsets = [37, 0], sizes = [1, 128], strides = [1, 1]} : vector<42x128xf32> to vector<1x128xf32>
    %39 = vector.extract_strided_slice %0 {offsets = [38, 0], sizes = [1, 128], strides = [1, 1]} : vector<42x128xf32> to vector<1x128xf32>
    %40 = vector.extract_strided_slice %0 {offsets = [39, 0], sizes = [1, 128], strides = [1, 1]} : vector<42x128xf32> to vector<1x128xf32>
    %41 = vector.extract_strided_slice %0 {offsets = [40, 0], sizes = [1, 128], strides = [1, 1]} : vector<42x128xf32> to vector<1x128xf32>
    %42 = vector.extract_strided_slice %0 {offsets = [41, 0], sizes = [1, 128], strides = [1, 1]} : vector<42x128xf32> to vector<1x128xf32>
    %c0_i32 = arith.constant 0 : i32
    %c16_i32 = arith.constant 16 : i32
    %43 = arith.muli %c0_i32, %c16_i32 : i32
    %44 = tpu.assume_multiple %43, 16 : i32
    %45 = arith.index_cast %44 : i32 to index
    %c0_1 = arith.constant 0 : index
    %46 = vector.load %arg1[%45, %c0_1] : memref<16x128xf32, #tpu.memory_space<vmem>>, vector<16x128xf32>
    %cst = arith.constant 0.000000e+00 : f32
    %47 = vector.broadcast %cst : f32 to vector<16x128xf32>
    %48 = arith.subf %47, %46 : vector<16x128xf32>
    %49 = math.exp %48 : vector<16x128xf32>
    %cst_2 = arith.constant 1.000000e+00 : f32
    %50 = vector.broadcast %cst_2 : f32 to vector<16x128xf32>
    %51 = arith.addf %50, %49 : vector<16x128xf32>
    %cst_3 = arith.constant 1.000000e+00 : f32
    %52 = vector.broadcast %cst_3 : f32 to vector<16x128xf32>
    %53 = arith.divf %52, %51 : vector<16x128xf32>
    %54 = arith.mulf %46, %53 : vector<16x128xf32>
    %55 = arith.truncf %54 : vector<16x128xf32> to vector<16x128xbf16>
    %56 = arith.index_cast %44 : i32 to index
    %c0_4 = arith.constant 0 : index
    %57 = vector.load %arg5[%56, %c0_4] : memref<16x1152xbf16, #tpu.memory_space<vmem>>, vector<16x128xbf16>
    tpu.vector_store %arg5[%56, %c0_4], %55 {strides = array<i32>} : memref<16x1152xbf16, #tpu.memory_space<vmem>>, vector<16x128xbf16>,
    %58 = vector.broadcast %1 : vector<1x128xf32> to vector<16x128xf32>
    %59 = arith.cmpf oge, %46, %58 : vector<16x128xf32>
    %60 = arith.extui %59 : vector<16x128xi1> to vector<16x128xi32>
    %61 = arith.sitofp %60 : vector<16x128xi32> to vector<16x128xf32>
    %62 = vector.broadcast %2 : vector<1x128xf32> to vector<16x128xf32>
    %63 = arith.cmpf oge, %46, %62 : vector<16x128xf32>
    %64 = arith.extui %63 : vector<16x128xi1> to vector<16x128xi32>
    %65 = arith.sitofp %64 : vector<16x128xi32> to vector<16x128xf32>
    %66 = arith.subf %61, %65 : vector<16x128xf32>
    %67 = vector.broadcast %3 : vector<1x128xf32> to vector<16x128xf32>
    %68 = arith.cmpf oge, %46, %67 : vector<16x128xf32>
    %69 = arith.extui %68 : vector<16x128xi1> to vector<16x128xi32>
    %70 = arith.sitofp %69 : vector<16x128xi32> to vector<16x128xf32>
    %71 = arith.subf %65, %70 : vector<16x128xf32>
    %72 = vector.broadcast %4 : vector<1x128xf32> to vector<16x128xf32>
    %73 = arith.cmpf oge, %46, %72 : vector<16x128xf32>
    %74 = arith.extui %73 : vector<16x128xi1> to vector<16x128xi32>
    %75 = arith.sitofp %74 : vector<16x128xi32> to vector<16x128xf32>
    %76 = arith.subf %70, %75 : vector<16x128xf32>
    %77 = vector.broadcast %5 : vector<1x128xf32> to vector<16x128xf32>
    %78 = arith.cmpf oge, %46, %77 : vector<16x128xf32>
    %79 = arith.extui %78 : vector<16x128xi1> to vector<16x128xi32>
    %80 = arith.sitofp %79 : vector<16x128xi32> to vector<16x128xf32>
    %81 = arith.subf %75, %80 : vector<16x128xf32>
    %82 = vector.broadcast %6 : vector<1x128xf32> to vector<16x128xf32>
    %83 = arith.cmpf oge, %46, %82 : vector<16x128xf32>
    %84 = arith.extui %83 : vector<16x128xi1> to vector<16x128xi32>
    %85 = arith.sitofp %84 : vector<16x128xi32> to vector<16x128xf32>
    %86 = arith.subf %80, %85 : vector<16x128xf32>
    %87 = vector.broadcast %7 : vector<1x128xf32> to vector<16x128xf32>
    %88 = arith.cmpf oge, %46, %87 : vector<16x128xf32>
    %89 = arith.extui %88 : vector<16x128xi1> to vector<16x128xi32>
    %90 = arith.sitofp %89 : vector<16x128xi32> to vector<16x128xf32>
    %91 = arith.subf %85, %90 : vector<16x128xf32>
    %92 = vector.broadcast %8 : vector<1x128xf32> to vector<16x128xf32>
    %93 = arith.cmpf oge, %46, %92 : vector<16x128xf32>
    %94 = arith.extui %93 : vector<16x128xi1> to vector<16x128xi32>
    %95 = arith.sitofp %94 : vector<16x128xi32> to vector<16x128xf32>
    %96 = arith.subf %90, %95 : vector<16x128xf32>
    %97 = vector.broadcast %9 : vector<1x128xf32> to vector<16x128xf32>
    %98 = arith.cmpf oge, %46, %97 : vector<16x128xf32>
    %99 = arith.extui %98 : vector<16x128xi1> to vector<16x128xi32>
    %100 = arith.sitofp %99 : vector<16x128xi32> to vector<16x128xf32>
    %101 = arith.subf %95, %100 : vector<16x128xf32>
    %102 = vector.broadcast %10 : vector<1x128xf32> to vector<16x128xf32>
    %103 = arith.cmpf oge, %46, %102 : vector<16x128xf32>
    %104 = arith.extui %103 : vector<16x128xi1> to vector<16x128xi32>
    %105 = arith.sitofp %104 : vector<16x128xi32> to vector<16x128xf32>
    %106 = arith.subf %100, %105 : vector<16x128xf32>
    %107 = vector.broadcast %11 : vector<1x128xf32> to vector<16x128xf32>
    %108 = arith.cmpf oge, %46, %107 : vector<16x128xf32>
    %109 = arith.extui %108 : vector<16x128xi1> to vector<16x128xi32>
    %110 = arith.sitofp %109 : vector<16x128xi32> to vector<16x128xf32>
    %111 = arith.subf %105, %110 : vector<16x128xf32>
    %112 = vector.broadcast %12 : vector<1x128xf32> to vector<16x128xf32>
    %113 = arith.cmpf oge, %46, %112 : vector<16x128xf32>
    %114 = arith.extui %113 : vector<16x128xi1> to vector<16x128xi32>
    %115 = arith.sitofp %114 : vector<16x128xi32> to vector<16x128xf32>
    %116 = arith.subf %110, %115 : vector<16x128xf32>
    %117 = vector.broadcast %1 : vector<1x128xf32> to vector<16x128xf32>
    %118 = arith.subf %46, %117 : vector<16x128xf32>
    %119 = vector.broadcast %2 : vector<1x128xf32> to vector<16x128xf32>
    %120 = arith.subf %46, %119 : vector<16x128xf32>
    %121 = vector.broadcast %3 : vector<1x128xf32> to vector<16x128xf32>
    %122 = arith.subf %46, %121 : vector<16x128xf32>
    %123 = vector.broadcast %4 : vector<1x128xf32> to vector<16x128xf32>
    %124 = arith.subf %46, %123 : vector<16x128xf32>
    %125 = vector.broadcast %5 : vector<1x128xf32> to vector<16x128xf32>
    %126 = arith.subf %46, %125 : vector<16x128xf32>
    %127 = vector.broadcast %6 : vector<1x128xf32> to vector<16x128xf32>
    %128 = arith.subf %46, %127 : vector<16x128xf32>
    %129 = vector.broadcast %7 : vector<1x128xf32> to vector<16x128xf32>
    %130 = arith.subf %46, %129 : vector<16x128xf32>
    %131 = vector.broadcast %8 : vector<1x128xf32> to vector<16x128xf32>
    %132 = arith.subf %46, %131 : vector<16x128xf32>
    %133 = vector.broadcast %9 : vector<1x128xf32> to vector<16x128xf32>
    %134 = arith.subf %46, %133 : vector<16x128xf32>
    %135 = vector.broadcast %10 : vector<1x128xf32> to vector<16x128xf32>
    %136 = arith.subf %46, %135 : vector<16x128xf32>
    %137 = vector.broadcast %11 : vector<1x128xf32> to vector<16x128xf32>
    %138 = arith.subf %46, %137 : vector<16x128xf32>
    %139 = vector.broadcast %13 : vector<1x128xf32> to vector<16x128xf32>
    %140 = arith.mulf %118, %139 : vector<16x128xf32>
    %141 = vector.broadcast %14 : vector<1x128xf32> to vector<16x128xf32>
    %142 = arith.mulf %120, %141 : vector<16x128xf32>
    %143 = arith.mulf %140, %66 : vector<16x128xf32>
    %cst_5 = arith.constant 1.000000e+00 : f32
    %144 = vector.broadcast %cst_5 : f32 to vector<16x128xf32>
    %145 = arith.subf %144, %142 : vector<16x128xf32>
    %146 = arith.mulf %145, %71 : vector<16x128xf32>
    %147 = arith.addf %143, %146 : vector<16x128xf32>
    %148 = vector.broadcast %15 : vector<1x128xf32> to vector<16x128xf32>
    %149 = arith.mulf %122, %148 : vector<16x128xf32>
    %150 = arith.mulf %142, %71 : vector<16x128xf32>
    %cst_6 = arith.constant 1.000000e+00 : f32
    %151 = vector.broadcast %cst_6 : f32 to vector<16x128xf32>
    %152 = arith.subf %151, %149 : vector<16x128xf32>
    %153 = arith.mulf %152, %76 : vector<16x128xf32>
    %154 = arith.addf %150, %153 : vector<16x128xf32>
    %155 = vector.broadcast %16 : vector<1x128xf32> to vector<16x128xf32>
    %156 = arith.mulf %124, %155 : vector<16x128xf32>
    %157 = arith.mulf %149, %76 : vector<16x128xf32>
    %cst_7 = arith.constant 1.000000e+00 : f32
    %158 = vector.broadcast %cst_7 : f32 to vector<16x128xf32>
    %159 = arith.subf %158, %156 : vector<16x128xf32>
    %160 = arith.mulf %159, %81 : vector<16x128xf32>
    %161 = arith.addf %157, %160 : vector<16x128xf32>
    %162 = vector.broadcast %17 : vector<1x128xf32> to vector<16x128xf32>
    %163 = arith.mulf %126, %162 : vector<16x128xf32>
    %164 = arith.mulf %156, %81 : vector<16x128xf32>
    %cst_8 = arith.constant 1.000000e+00 : f32
    %165 = vector.broadcast %cst_8 : f32 to vector<16x128xf32>
    %166 = arith.subf %165, %163 : vector<16x128xf32>
    %167 = arith.mulf %166, %86 : vector<16x128xf32>
    %168 = arith.addf %164, %167 : vector<16x128xf32>
    %169 = vector.broadcast %18 : vector<1x128xf32> to vector<16x128xf32>
    %170 = arith.mulf %128, %169 : vector<16x128xf32>
    %171 = arith.mulf %163, %86 : vector<16x128xf32>
    %cst_9 = arith.constant 1.000000e+00 : f32
    %172 = vector.broadcast %cst_9 : f32 to vector<16x128xf32>
    %173 = arith.subf %172, %170 : vector<16x128xf32>
    %174 = arith.mulf %173, %91 : vector<16x128xf32>
    %175 = arith.addf %171, %174 : vector<16x128xf32>
    %176 = vector.broadcast %19 : vector<1x128xf32> to vector<16x128xf32>
    %177 = arith.mulf %130, %176 : vector<16x128xf32>
    %178 = arith.mulf %170, %91 : vector<16x128xf32>
    %cst_10 = arith.constant 1.000000e+00 : f32
    %179 = vector.broadcast %cst_10 : f32 to vector<16x128xf32>
    %180 = arith.subf %179, %177 : vector<16x128xf32>
    %181 = arith.mulf %180, %96 : vector<16x128xf32>
    %182 = arith.addf %178, %181 : vector<16x128xf32>
    %183 = vector.broadcast %20 : vector<1x128xf32> to vector<16x128xf32>
    %184 = arith.mulf %132, %183 : vector<16x128xf32>
    %185 = arith.mulf %177, %96 : vector<16x128xf32>
    %cst_11 = arith.constant 1.000000e+00 : f32
    %186 = vector.broadcast %cst_11 : f32 to vector<16x128xf32>
    %187 = arith.subf %186, %184 : vector<16x128xf32>
    %188 = arith.mulf %187, %101 : vector<16x128xf32>
    %189 = arith.addf %185, %188 : vector<16x128xf32>
    %190 = vector.broadcast %21 : vector<1x128xf32> to vector<16x128xf32>
    %191 = arith.mulf %134, %190 : vector<16x128xf32>
    %192 = arith.mulf %184, %101 : vector<16x128xf32>
    %cst_12 = arith.constant 1.000000e+00 : f32
    %193 = vector.broadcast %cst_12 : f32 to vector<16x128xf32>
    %194 = arith.subf %193, %191 : vector<16x128xf32>
    %195 = arith.mulf %194, %106 : vector<16x128xf32>
    %196 = arith.addf %192, %195 : vector<16x128xf32>
    %197 = vector.broadcast %22 : vector<1x128xf32> to vector<16x128xf32>
    %198 = arith.mulf %136, %197 : vector<16x128xf32>
    %199 = arith.mulf %191, %106 : vector<16x128xf32>
    %cst_13 = arith.constant 1.000000e+00 : f32
    %200 = vector.broadcast %cst_13 : f32 to vector<16x128xf32>
    %201 = arith.subf %200, %198 : vector<16x128xf32>
    %202 = arith.mulf %201, %111 : vector<16x128xf32>
    %203 = arith.addf %199, %202 : vector<16x128xf32>
    %204 = vector.broadcast %23 : vector<1x128xf32> to vector<16x128xf32>
    %205 = arith.mulf %138, %204 : vector<16x128xf32>
    %206 = arith.mulf %198, %111 : vector<16x128xf32>
    %cst_14 = arith.constant 1.000000e+00 : f32
    %207 = vector.broadcast %cst_14 : f32 to vector<16x128xf32>
    %208 = arith.subf %207, %205 : vector<16x128xf32>
    %209 = arith.mulf %208, %116 : vector<16x128xf32>
    %210 = arith.addf %206, %209 : vector<16x128xf32>
    %211 = vector.broadcast %24 : vector<1x128xf32> to vector<16x128xf32>
    %212 = arith.mulf %118, %211 : vector<16x128xf32>
    %213 = vector.broadcast %25 : vector<1x128xf32> to vector<16x128xf32>
    %214 = arith.mulf %120, %213 : vector<16x128xf32>
    %215 = arith.mulf %212, %147 : vector<16x128xf32>
    %cst_15 = arith.constant 1.000000e+00 : f32
    %216 = vector.broadcast %cst_15 : f32 to vector<16x128xf32>
    %217 = arith.subf %216, %214 : vector<16x128xf32>
    %218 = arith.mulf %217, %154 : vector<16x128xf32>
    %219 = arith.addf %215, %218 : vector<16x128xf32>
    %220 = vector.broadcast %26 : vector<1x128xf32> to vector<16x128xf32>
    %221 = arith.mulf %122, %220 : vector<16x128xf32>
    %222 = arith.mulf %214, %154 : vector<16x128xf32>
    %cst_16 = arith.constant 1.000000e+00 : f32
    %223 = vector.broadcast %cst_16 : f32 to vector<16x128xf32>
    %224 = arith.subf %223, %221 : vector<16x128xf32>
    %225 = arith.mulf %224, %161 : vector<16x128xf32>
    %226 = arith.addf %222, %225 : vector<16x128xf32>
    %227 = vector.broadcast %27 : vector<1x128xf32> to vector<16x128xf32>
    %228 = arith.mulf %124, %227 : vector<16x128xf32>
    %229 = arith.mulf %221, %161 : vector<16x128xf32>
    %cst_17 = arith.constant 1.000000e+00 : f32
    %230 = vector.broadcast %cst_17 : f32 to vector<16x128xf32>
    %231 = arith.subf %230, %228 : vector<16x128xf32>
    %232 = arith.mulf %231, %168 : vector<16x128xf32>
    %233 = arith.addf %229, %232 : vector<16x128xf32>
    %234 = vector.broadcast %28 : vector<1x128xf32> to vector<16x128xf32>
    %235 = arith.mulf %126, %234 : vector<16x128xf32>
    %236 = arith.mulf %228, %168 : vector<16x128xf32>
    %cst_18 = arith.constant 1.000000e+00 : f32
    %237 = vector.broadcast %cst_18 : f32 to vector<16x128xf32>
    %238 = arith.subf %237, %235 : vector<16x128xf32>
    %239 = arith.mulf %238, %175 : vector<16x128xf32>
    %240 = arith.addf %236, %239 : vector<16x128xf32>
    %241 = vector.broadcast %29 : vector<1x128xf32> to vector<16x128xf32>
    %242 = arith.mulf %128, %241 : vector<16x128xf32>
    %243 = arith.mulf %235, %175 : vector<16x128xf32>
    %cst_19 = arith.constant 1.000000e+00 : f32
    %244 = vector.broadcast %cst_19 : f32 to vector<16x128xf32>
    %245 = arith.subf %244, %242 : vector<16x128xf32>
    %246 = arith.mulf %245, %182 : vector<16x128xf32>
    %247 = arith.addf %243, %246 : vector<16x128xf32>
    %248 = vector.broadcast %30 : vector<1x128xf32> to vector<16x128xf32>
    %249 = arith.mulf %130, %248 : vector<16x128xf32>
    %250 = arith.mulf %242, %182 : vector<16x128xf32>
    %cst_20 = arith.constant 1.000000e+00 : f32
    %251 = vector.broadcast %cst_20 : f32 to vector<16x128xf32>
    %252 = arith.subf %251, %249 : vector<16x128xf32>
    %253 = arith.mulf %252, %189 : vector<16x128xf32>
    %254 = arith.addf %250, %253 : vector<16x128xf32>
    %255 = vector.broadcast %31 : vector<1x128xf32> to vector<16x128xf32>
    %256 = arith.mulf %132, %255 : vector<16x128xf32>
    %257 = arith.mulf %249, %189 : vector<16x128xf32>
    %cst_21 = arith.constant 1.000000e+00 : f32
    %258 = vector.broadcast %cst_21 : f32 to vector<16x128xf32>
    %259 = arith.subf %258, %256 : vector<16x128xf32>
    %260 = arith.mulf %259, %196 : vector<16x128xf32>
    %261 = arith.addf %257, %260 : vector<16x128xf32>
    %262 = vector.broadcast %32 : vector<1x128xf32> to vector<16x128xf32>
    %263 = arith.mulf %134, %262 : vector<16x128xf32>
    %264 = arith.mulf %256, %196 : vector<16x128xf32>
    %cst_22 = arith.constant 1.000000e+00 : f32
    %265 = vector.broadcast %cst_22 : f32 to vector<16x128xf32>
    %266 = arith.subf %265, %263 : vector<16x128xf32>
    %267 = arith.mulf %266, %203 : vector<16x128xf32>
    %268 = arith.addf %264, %267 : vector<16x128xf32>
    %269 = vector.broadcast %33 : vector<1x128xf32> to vector<16x128xf32>
    %270 = arith.mulf %136, %269 : vector<16x128xf32>
    %271 = arith.mulf %263, %203 : vector<16x128xf32>
    %cst_23 = arith.constant 1.000000e+00 : f32
    %272 = vector.broadcast %cst_23 : f32 to vector<16x128xf32>
    %273 = arith.subf %272, %270 : vector<16x128xf32>
    %274 = arith.mulf %273, %210 : vector<16x128xf32>
    %275 = arith.addf %271, %274 : vector<16x128xf32>
    %276 = vector.broadcast %34 : vector<1x128xf32> to vector<16x128xf32>
    %277 = arith.mulf %118, %276 : vector<16x128xf32>
    %278 = vector.broadcast %35 : vector<1x128xf32> to vector<16x128xf32>
    %279 = arith.mulf %120, %278 : vector<16x128xf32>
    %280 = arith.mulf %277, %219 : vector<16x128xf32>
    %cst_24 = arith.constant 1.000000e+00 : f32
    %281 = vector.broadcast %cst_24 : f32 to vector<16x128xf32>
    %282 = arith.subf %281, %279 : vector<16x128xf32>
    %283 = arith.mulf %282, %226 : vector<16x128xf32>
    %284 = arith.addf %280, %283 : vector<16x128xf32>
    %285 = vector.broadcast %36 : vector<1x128xf32> to vector<16x128xf32>
    %286 = arith.mulf %122, %285 : vector<16x128xf32>
    %287 = arith.mulf %279, %226 : vector<16x128xf32>
    %cst_25 = arith.constant 1.000000e+00 : f32
    %288 = vector.broadcast %cst_25 : f32 to vector<16x128xf32>
    %289 = arith.subf %288, %286 : vector<16x128xf32>
    %290 = arith.mulf %289, %233 : vector<16x128xf32>
    %291 = arith.addf %287, %290 : vector<16x128xf32>
    %292 = vector.broadcast %37 : vector<1x128xf32> to vector<16x128xf32>
    %293 = arith.mulf %124, %292 : vector<16x128xf32>
    %294 = arith.mulf %286, %233 : vector<16x128xf32>
    %cst_26 = arith.constant 1.000000e+00 : f32
    %295 = vector.broadcast %cst_26 : f32 to vector<16x128xf32>
    %296 = arith.subf %295, %293 : vector<16x128xf32>
    %297 = arith.mulf %296, %240 : vector<16x128xf32>
    %298 = arith.addf %294, %297 : vector<16x128xf32>
    %299 = vector.broadcast %38 : vector<1x128xf32> to vector<16x128xf32>
    %300 = arith.mulf %126, %299 : vector<16x128xf32>
    %301 = arith.mulf %293, %240 : vector<16x128xf32>
    %cst_27 = arith.constant 1.000000e+00 : f32
    %302 = vector.broadcast %cst_27 : f32 to vector<16x128xf32>
    %303 = arith.subf %302, %300 : vector<16x128xf32>
    %304 = arith.mulf %303, %247 : vector<16x128xf32>
    %305 = arith.addf %301, %304 : vector<16x128xf32>
    %306 = vector.broadcast %39 : vector<1x128xf32> to vector<16x128xf32>
    %307 = arith.mulf %128, %306 : vector<16x128xf32>
    %308 = arith.mulf %300, %247 : vector<16x128xf32>
    %cst_28 = arith.constant 1.000000e+00 : f32
    %309 = vector.broadcast %cst_28 : f32 to vector<16x128xf32>
    %310 = arith.subf %309, %307 : vector<16x128xf32>
    %311 = arith.mulf %310, %254 : vector<16x128xf32>
    %312 = arith.addf %308, %311 : vector<16x128xf32>
    %313 = vector.broadcast %40 : vector<1x128xf32> to vector<16x128xf32>
    %314 = arith.mulf %130, %313 : vector<16x128xf32>
    %315 = arith.mulf %307, %254 : vector<16x128xf32>
    %cst_29 = arith.constant 1.000000e+00 : f32
    %316 = vector.broadcast %cst_29 : f32 to vector<16x128xf32>
    %317 = arith.subf %316, %314 : vector<16x128xf32>
    %318 = arith.mulf %317, %261 : vector<16x128xf32>
    %319 = arith.addf %315, %318 : vector<16x128xf32>
    %320 = vector.broadcast %41 : vector<1x128xf32> to vector<16x128xf32>
    %321 = arith.mulf %132, %320 : vector<16x128xf32>
    %322 = arith.mulf %314, %261 : vector<16x128xf32>
    %cst_30 = arith.constant 1.000000e+00 : f32
    %323 = vector.broadcast %cst_30 : f32 to vector<16x128xf32>
    %324 = arith.subf %323, %321 : vector<16x128xf32>
    %325 = arith.mulf %324, %268 : vector<16x128xf32>
    %326 = arith.addf %322, %325 : vector<16x128xf32>
    %327 = vector.broadcast %42 : vector<1x128xf32> to vector<16x128xf32>
    %328 = arith.mulf %134, %327 : vector<16x128xf32>
    %329 = arith.mulf %321, %268 : vector<16x128xf32>
    %cst_31 = arith.constant 1.000000e+00 : f32
    %330 = vector.broadcast %cst_31 : f32 to vector<16x128xf32>
    %331 = arith.subf %330, %328 : vector<16x128xf32>
    %332 = arith.mulf %331, %275 : vector<16x128xf32>
    %333 = arith.addf %329, %332 : vector<16x128xf32>
    %334 = arith.truncf %284 : vector<16x128xf32> to vector<16x128xbf16>
    %335 = arith.index_cast %44 : i32 to index
    %c128 = arith.constant 128 : index
    %336 = vector.load %arg5[%335, %c128] : memref<16x1152xbf16, #tpu.memory_space<vmem>>, vector<16x128xbf16>
    tpu.vector_store %arg5[%335, %c128], %334 {strides = array<i32>} : memref<16x1152xbf16, #tpu.memory_space<vmem>>, vector<16x128xbf16>,
    %337 = arith.truncf %291 : vector<16x128xf32> to vector<16x128xbf16>
    %338 = arith.index_cast %44 : i32 to index
    %c256 = arith.constant 256 : index
    %339 = vector.load %arg5[%338, %c256] : memref<16x1152xbf16, #tpu.memory_space<vmem>>, vector<16x128xbf16>
    tpu.vector_store %arg5[%338, %c256], %337 {strides = array<i32>} : memref<16x1152xbf16, #tpu.memory_space<vmem>>, vector<16x128xbf16>,
    %340 = arith.truncf %298 : vector<16x128xf32> to vector<16x128xbf16>
    %341 = arith.index_cast %44 : i32 to index
    %c384 = arith.constant 384 : index
    %342 = vector.load %arg5[%341, %c384] : memref<16x1152xbf16, #tpu.memory_space<vmem>>, vector<16x128xbf16>
    tpu.vector_store %arg5[%341, %c384], %340 {strides = array<i32>} : memref<16x1152xbf16, #tpu.memory_space<vmem>>, vector<16x128xbf16>,
    %343 = arith.truncf %305 : vector<16x128xf32> to vector<16x128xbf16>
    %344 = arith.index_cast %44 : i32 to index
    %c512 = arith.constant 512 : index
    %345 = vector.load %arg5[%344, %c512] : memref<16x1152xbf16, #tpu.memory_space<vmem>>, vector<16x128xbf16>
    tpu.vector_store %arg5[%344, %c512], %343 {strides = array<i32>} : memref<16x1152xbf16, #tpu.memory_space<vmem>>, vector<16x128xbf16>,
    %346 = arith.truncf %312 : vector<16x128xf32> to vector<16x128xbf16>
    %347 = arith.index_cast %44 : i32 to index
    %c640 = arith.constant 640 : index
    %348 = vector.load %arg5[%347, %c640] : memref<16x1152xbf16, #tpu.memory_space<vmem>>, vector<16x128xbf16>
    tpu.vector_store %arg5[%347, %c640], %346 {strides = array<i32>} : memref<16x1152xbf16, #tpu.memory_space<vmem>>, vector<16x128xbf16>,
    %349 = arith.truncf %319 : vector<16x128xf32> to vector<16x128xbf16>
    %350 = arith.index_cast %44 : i32 to index
    %c768 = arith.constant 768 : index
    %351 = vector.load %arg5[%350, %c768] : memref<16x1152xbf16, #tpu.memory_space<vmem>>, vector<16x128xbf16>
    tpu.vector_store %arg5[%350, %c768], %349 {strides = array<i32>} : memref<16x1152xbf16, #tpu.memory_space<vmem>>, vector<16x128xbf16>,
    %352 = arith.truncf %326 : vector<16x128xf32> to vector<16x128xbf16>
    %353 = arith.index_cast %44 : i32 to index
    %c896 = arith.constant 896 : index
    %354 = vector.load %arg5[%353, %c896] : memref<16x1152xbf16, #tpu.memory_space<vmem>>, vector<16x128xbf16>
    tpu.vector_store %arg5[%353, %c896], %352 {strides = array<i32>} : memref<16x1152xbf16, #tpu.memory_space<vmem>>, vector<16x128xbf16>,
    %355 = arith.truncf %333 : vector<16x128xf32> to vector<16x128xbf16>
    %356 = arith.index_cast %44 : i32 to index
    %c1024 = arith.constant 1024 : index
    %357 = vector.load %arg5[%356, %c1024] : memref<16x1152xbf16, #tpu.memory_space<vmem>>, vector<16x128xbf16>
    tpu.vector_store %arg5[%356, %c1024], %355 {strides = array<i32>} : memref<16x1152xbf16, #tpu.memory_space<vmem>>, vector<16x128xbf16>,
    %c1_i32 = arith.constant 1 : i32
    %c0_32 = arith.constant 0 : index
    %c0_33 = arith.constant 0 : index
    %358 = vector.load %arg5[%c0_32, %c0_33] : memref<16x1152xbf16, #tpu.memory_space<vmem>>, vector<16x1152xbf16>
    %c0_34 = arith.constant 0 : index
    %c0_35 = arith.constant 0 : index
    %359 = vector.load %arg3[%c0_34, %c0_35] : memref<1152x128xbf16, #tpu.memory_space<vmem>>, vector<1152x128xbf16>
    %cst_36 = arith.constant dense<0.000000e+00> : vector<16x128xf32>
    %360 = tpu.matmul %358, %359, %cst_36 {dimension_numbers = #tpu.dot_dimension_numbers<[1], [0], [0], [1], [0, 0, 1, 1], [], []>} : vector<16x1152xbf16>, vector<1152x128xbf16>, vector<16x128xf32> -> vector<16x128xf32>
    %c0_37 = arith.constant 0 : index
    %c0_38 = arith.constant 0 : index
    %361 = vector.load %arg4[%c0_37, %c0_38] : memref<16x128xf32, #tpu.memory_space<vmem>>, vector<16x128xf32>
    tpu.vector_store %arg4[%c0_37, %c0_38], %360 {strides = array<i32>} : memref<16x128xf32, #tpu.memory_space<vmem>>, vector<16x128xf32>,
    return
  }
  func.func @transform_0(%arg0: i32) -> (i32, i32) {
    %c0_i32 = arith.constant 0 : i32
    %c0_i32_0 = arith.constant 0 : i32
    return %arg0, %c0_i32 : i32, i32
  }
  func.func @transform_1(%arg0: i32) -> (i32, i32) {
    %c0_i32 = arith.constant 0 : i32
    %c0_i32_0 = arith.constant 0 : i32
    %c0_i32_1 = arith.constant 0 : i32
    return %c0_i32, %c0_i32_0 : i32, i32
  }
  func.func @transform_2(%arg0: i32) -> (i32, i32) {
    %c0_i32 = arith.constant 0 : i32
    %c0_i32_0 = arith.constant 0 : i32
    %c0_i32_1 = arith.constant 0 : i32
    return %c0_i32, %c0_i32_0 : i32, i32
  }
  func.func @transform_3(%arg0: i32) -> (i32, i32) {
    %c0_i32 = arith.constant 0 : i32
    %c0_i32_0 = arith.constant 0 : i32
    return %arg0, %c0_i32 : i32, i32
  }
}

</mosaic_0001>

<bundles_post_ra>
// kernel: kan_linear_forward.1
= control target key start
LH: loop header
LB: loop body
LE: loop exit
PB: predicated region body
PF: predicated region fallthrough
CT: control target
= control target key end

     0   :  { %8 = vsyncpa [#allocation4], 0  ;;  %s1827_s15 = smov [#allocation3]   ;;  %s1828_s17 = smov 64   ;;  %s2495_s0 = inlined_call_operand.vmem [shape: f32[16,128], index: 0, kind: input, shape index: {}]   ;;  %s2496_s1 = inlined_call_operand.vmem [shape: f32[42,128], index: 1, kind: input, shape index: {}]   ;;  %s2497_s2 = inlined_call_operand.hbm [shape: bf16[1152,128], index: 2, kind: input, shape index: {}]   ;;  %s2498_s3 = inlined_call_operand.vmem [shape: f32[16,128], index: 3, kind: output, shape index: {}]  }
   0x1   :  { %s17_s14 = sshll.u32 %s2497_s2, 4  ;;  %s19_s16 = sshll.u32 %s1827_s15, 4  ;;  %s18_s14 = int_to_ptr.hbm [resolvable:$true] %s17_s14  ;;  %s20_s16 = int_to_ptr.vmem [resolvable:$true] %s19_s16 }
   0x2   :  { %s1829_s18 = smov 4  }
   0x3   :  { %25 = dma.hbm_to_vmem [thread:$0]  %s18_s14, 9216, %s20_s16, [#allocation4], %s1828_s17, %s1828_s17, %s1829_s18  }
   0x4   :  { %1825 = dma.done.wait [#allocation4], 9216  }
   0x5   :  { %1826 = vsyncadd [#allocation4], 4294958080  ;;  %v1680_v0 = vld [vmem:[#allocation3 + $0x38] sm:$0xff]  ;;  %v1679_v4 = vld [vmem:[#allocation3 + $0x30] sm:$0xff]  ;;  %v1830_v35 = vmov 0.0  }
   0x6   :  { %v1696_v1 = vld [vmem:[#allocation3 + $0xb8] sm:$0xff]  ;;  %1183 = vmatpush.bf16.msra.mxu0 %v1680_v0  ;;  %v1695_v5 = vld [vmem:[#allocation3 + $0xb0] sm:$0xff]  ;;  %v1678_v8 = vld [vmem:[#allocation3 + $0x28] sm:$0xff] }
   0x7   :  { %v1688_v2 = vld [vmem:[#allocation3 + $0x78] sm:$0xff]  ;;  %1211 = vmatpush.bf16.msra.mxu2 %v1696_v1  ;;  %v1687_v6 = vld [vmem:[#allocation3 + $0x70] sm:$0xff]  ;;  %v1694_v9 = vld [vmem:[#allocation3 + $0xa8] sm:$0xff] }
   0x8   :  { %v1704_v3 = vld [vmem:[#allocation3 + $0xf8] sm:$0xff]  ;;  %1197 = vmatpush.bf16.msra.mxu1 %v1688_v2  ;;  %v1703_v7 = vld [vmem:[#allocation3 + $0xf0] sm:$0xff]  ;;  %v1686_v10 = vld [vmem:[#allocation3 + $0x68] sm:$0xff] }
   0x9   :  { %1225 = vmatpush.bf16.msra.mxu3 %v1704_v3  ;;  %v1702_v11 = vld [vmem:[#allocation3 + $0xe8] sm:$0xff]  ;;  %v1677_v12 = vld [vmem:[#allocation3 + $0x20] sm:$0xff]  ;;  %v1676_v16 = vld [vmem:[#allocation3 + $0x18] sm:$0xff] }
   0xa   :  { %1184 = vmatpush.bf16.msra.mxu0 %v1679_v4  ;;  %v1693_v13 = vld [vmem:[#allocation3 + $0xa0] sm:$0xff]  ;;  %v1692_v17 = vld [vmem:[#allocation3 + $0x98] sm:$0xff]  ;;  %v1675_v26 = vld [vmem:[#allocation3 + $0x10] sm:$0xff] }
   0xb   :  { %1212 = vmatpush.bf16.msra.mxu2 %v1695_v5  ;;  %v1685_v14 = vld [vmem:[#allocation3 + $0x60] sm:$0xff]  ;;  %v1684_v18 = vld [vmem:[#allocation3 + $0x58] sm:$0xff]  ;;  %v1691_v27 = vld [vmem:[#allocation3 + $0x90] sm:$0xff] }
   0xc   :  { %1198 = vmatpush.bf16.msra.mxu1 %v1687_v6  ;;  %v1701_v15 = vld [vmem:[#allocation3 + $0xe0] sm:$0xff]  ;;  %v1700_v19 = vld [vmem:[#allocation3 + $0xd8] sm:$0xff]  ;;  %v1683_v28 = vld [vmem:[#allocation3 + $0x50] sm:$0xff] }
   0xd   :  { %1226 = vmatpush.bf16.msra.mxu3 %v1703_v7  ;;  %v1857_v20 = vld [vmem:[%s2495_s0] sm:$0xff]  ;;  %v1862_v21 = vld [vmem:[%s2495_s0 + $0x8] sm:$0xff]  ;;  %v1699_v31 = vld [vmem:[#allocation3 + $0xd0] sm:$0xff] }
   0xe   :  { %1185 = vmatpush.bf16.msra.mxu0 %v1678_v8  ;;  %v1867_v22 = vld [vmem:[%s2496_s1] sm:$0xff]  ;;  %v38_v23 = vsub.f32 0.0, %v1857_v20  ;;  %v39_v24 = vsub.f32 0.0, %v1862_v21  ;;  %v1674_v39 = vld [vmem:[#allocation3 + $0x8] sm:$0xff]  ;;  %v1673_v54 = vld [vmem:[#allocation3] sm:$0xff] }
   0xf   :  { %1213 = vmatpush.bf16.msra.mxu2 %v1694_v9  ;;  %v1872_v25 = vperm.slane %v1867_v22, 0  ;;  %v1875_v29 = vperm.slane %v1867_v22, 1  ;;  %v1878_v30 = vperm.slane %v1867_v22, 2  ;;  %v1883_v34 = vperm.slane %v1867_v22, 3  ;;  %v1690_v40 = vld [vmem:[#allocation3 + $0x88] sm:$0xff]  ;;  %v1689_v55 = vld [vmem:[#allocation3 + $0x80] sm:$0xff] }
  0x10   :  { %1199 = vmatpush.bf16.msra.mxu1 %v1686_v10  ;;  %v40_v32 = vmul.f32 1.442695, %v38_v23  ;;  %v42_v33 = vmul.f32 1.442695, %v39_v24  ;;  %v1900_v38 = vperm.slane %v1867_v22, 4  ;;  %v1682_v44 = vld [vmem:[#allocation3 + $0x48] sm:$0xff] }
  0x11   :  { %1227 = vmatpush.bf16.msra.mxu3 %v1702_v11  ;;  %vm87_vm0 = vcmp.ge.f32.partialorder %v1862_v21, %v1872_v25  ;;  %vm93_vm1 = vcmp.ge.f32.partialorder %v1857_v20, %v1875_v29  ;;  %vm94_vm2 = vcmp.ge.f32.partialorder %v1862_v21, %v1875_v29  ;;  %vm102_vm3 = vcmp.ge.f32.partialorder %v1857_v20, %v1878_v30  ;;  %v1698_v45 = vld [vmem:[#allocation3 + $0xc8] sm:$0xff]  ;;  %v1712_v61 = vld [vmem:[#allocation3 + $0x138] sm:$0xff]  ;;  %v1681_v63 = vld [vmem:[#allocation3 + $0x40] sm:$0xff] }
  0x12   :  { %1186 = vmatpush.bf16.msra.mxu0 %v1677_v12  ;;  %v1886_v36 = vsel %vm87_vm0, 1.0, %v1830_v35  ;;  %1791 = vpow2.f32 %v40_v32  ;;  %v1895_v37 = vsel %vm94_vm2, 1.0, %v1830_v35  ;;  %vm103_vm4 = vcmp.ge.f32.partialorder %v1862_v21, %v1878_v30  ;;  %v1728_v62 = vld [vmem:[#allocation3 + $0x1b8] sm:$0xff]  ;;  %v1697_v1 = vld [vmem:[#allocation3 + $0xc0] sm:$0xff] }
  0x13   :  { %1214 = vmatpush.bf16.msra.mxu2 %v1693_v13  ;;  %1793 = vpow2.f32 %v42_v33  ;;  %v1903_v41 = vsel %vm93_vm1, 1.0, %v1830_v35  ;;  %v1320_v42 = vsel %vm102_vm3, 1.0, %v1830_v35  ;;  %v1321_v43 = vsel %vm103_vm4, 1.0, %v1830_v35  ;;  %v1950_v3 = vld [vmem:[%s2496_s1 + $0x8] sm:$0xff]  ;;  %v1720_v7 = vld [vmem:[#allocation3 + $0x178] sm:$0xff] }
  0x14   :  { %1200 = vmatpush.bf16.msra.mxu1 %v1685_v14  ;;  %v100_v46 = vsub.f32 %v1886_v36, %v1895_v37  ;;  %vm111_vm5 = vcmp.ge.f32.partialorder %v1857_v20, %v1883_v34  ;;  %v1912_v47 = vperm.slane %v1867_v22, 5  ;;  %v1915_v48 = vperm.slane %v1867_v22, 6  ;;  %v1736_v8 = vld [vmem:[#allocation3 + $0x1f8] sm:$0xff] }
  0x15   :  { %1228 = vmatpush.bf16.msra.mxu3 %v1701_v15  ;;  %vm112_vm6 = vcmp.ge.f32.partialorder %v1862_v21, %v1883_v34  ;;  %v1322_v49 = vsel %vm111_vm5, 1.0, %v1830_v35  ;;  %vm120_vm7 = vcmp.ge.f32.partialorder %v1857_v20, %v1900_v38  ;;  %vm121_vm8 = vcmp.ge.f32.partialorder %v1862_v21, %v1900_v38 }
  0x16   :  { %1187 = vmatpush.bf16.msra.mxu0 %v1676_v16  ;;  %v1925_v50 = vsub.f32 %v1903_v41, %v1320_v42  ;;  %v1928_v51 = vsub.f32 %v1895_v37, %v1321_v43  ;;  %v1323_v52 = vsel %vm112_vm6, 1.0, %v1830_v35  ;;  %v1324_v53 = vsel %vm120_vm7, 1.0, %v1830_v35  ;;  %v1711_v16 = vld [vmem:[#allocation3 + $0x130] sm:$0xff] }
  0x17   :  { %1215 = vmatpush.bf16.msra.mxu2 %v1692_v17  ;;  %v1932_v56 = vsub.f32 %v1320_v42, %v1322_v49  ;;  %v1934_v57 = vsub.f32 %v1321_v43, %v1323_v52  ;;  %v1325_v58 = vsel %vm121_vm8, 1.0, %v1830_v35  ;;  %v1937_v59 = vsub.f32 %v1322_v49, %v1324_v53  ;;  %v1727_v17 = vld [vmem:[#allocation3 + $0x1b0] sm:$0xff]  ;;  %v1710_v43 = vld [vmem:[#allocation3 + $0x128] sm:$0xff] }
  0x18   :  { %1201 = vmatpush.bf16.msra.mxu1 %v1684_v18  ;;  %v1792_v60 = vpop.eup %1791  ;;  %vm129_vm9 = vcmp.ge.f32.partialorder %v1857_v20, %v1912_v47  ;;  %vm130_vm10 = vcmp.ge.f32.partialorder %v1862_v21, %v1912_v47  ;;  %vm138_vm11 = vcmp.ge.f32.partialorder %v1857_v20, %v1915_v48  ;;  %v1961_v10 = vsub.f32 %v1323_v52, %v1325_v58 }
  0x19   :  { %1229 = vmatpush.bf16.msra.mxu3 %v1700_v19  ;;  %v1794_v0 = vpop.eup %1793  ;;  %v1945_v2 = vadd.f32 1.0, %v1792_v60  ;;  %v1326_v4 = vsel %vm129_vm9, 1.0, %v1830_v35  ;;  %v1954_v5 = vsel %vm130_vm10, 1.0, %v1830_v35  ;;  %v1957_v6 = vsel %vm138_vm11, 1.0, %v1830_v35 }
  0x1a   :  { %1188 = vmatpush.bf16.msra.mxu0 %v1675_v26  ;;  %v1959_v9 = vadd.f32 1.0, %v1794_v0  ;;  %v1964_v11 = vperm.slane %v1867_v22, 7  ;;  %v2501_v12 = vperm.slane %v1950_v3, 4  ;;  %v1969_v14 = vsub.f32 %v1324_v53, %v1326_v4  ;;  %v1719_v26 = vld [vmem:[#allocation3 + $0x170] sm:$0xff] }
  0x1b   :  { %1216 = vmatpush.bf16.msra.mxu2 %v1691_v27  ;;  %1795 = vrcp.f32 %v1945_v2  ;;  %v57_v13 = vand.u32 2147483648, %v1945_v2  ;;  %v1972_v15 = vsub.f32 %v1325_v58, %v1954_v5  ;;  %v55_v18 = vand.u32 2147483647, %v1945_v2  ;;  %v1735_v27 = vld [vmem:[#allocation3 + $0x1f0] sm:$0xff] }
  0x1c   :  { %1202 = vmatpush.bf16.msra.mxu1 %v1683_v28  ;;  %1797 = vrcp.f32 %v1959_v9  ;;  %v72_v19 = vand.u32 2147483648, %v1959_v9  ;;  %v1978_v22 = vsub.f32 %v1326_v4, %v1957_v6  ;;  %vm51_vm12 = vweird.f32 %v1945_v2 }
  0x1d   :  { %1230 = vmatpush.bf16.msra.mxu3 %v1699_v31  ;;  %v70_v23 = vand.u32 2147483647, %v1959_v9  ;;  %vm147_vm13 = vcmp.ge.f32.partialorder %v1857_v20, %v1964_v11  ;;  %v1986_v24 = vsub.f32 %v1862_v21, %v1872_v25  ;;  %v1988_v28 = vor.u32 1.1754944e-38, %v57_v13  ;;  %v1709_v13 = vld [vmem:[#allocation3 + $0x120] sm:$0xff] }
  0x1e   :  { %1189 = vmatpush.bf16.msra.mxu0 %v1674_v39  ;;  %vm66_vm14 = vweird.f32 %v1959_v9  ;;  %v1991_v31 = vor.u32 1.1754944e-38, %v72_v19  ;;  %v1995_v32 = vsub.f32 %v1857_v20, %v1875_v29  ;;  %v1998_v33 = vsel %vm147_vm13, 1.0, %v1830_v35 }
  0x1f   :  { %1217 = vmatpush.bf16.msra.mxu2 %v1690_v40  ;;  %v2002_v39 = vsub.f32 %v1862_v21, %v1875_v29  ;;  %v2006_v40 = vsub.f32 %v1857_v20, %v1878_v30  ;;  %v2010_v42 = vsub.f32 %v1862_v21, %v1878_v30  ;;  %vm2012_vm15 = vcmp.eq.f32.partialorder %v55_v18, 8.507059e+37 }
  0x20   :  { %1203 = vmatpush.bf16.msra.mxu1 %v1682_v44  ;;  %v1726_v44 = vld [vmem:[#allocation3 + $0x1a8] sm:$0xff]  ;;  %v2018_v29 = vsub.f32 %v1857_v20, %v1883_v34  ;;  %v2022_v49 = vsub.f32 %v1862_v21, %v1883_v34  ;;  %v2026_v30 = vsub.f32 %v1857_v20, %v1900_v38  ;;  %v216_v52 = vperm.slane %v1950_v3, 5 }
  0x21   :  { %1231 = vmatpush.bf16.msra.mxu3 %v1698_v45  ;;  %v2029_v53 = vpop.eup %1795  ;;  %vm2031_vm0 = vcmp.eq.f32.partialorder %v70_v23, 8.507059e+37  ;;  %v2041_v34 = vsub.f32 %v1857_v20, %v1912_v47  ;;  %v215_v58 = vmul.f32 %v2501_v12, %v1986_v24  ;;  %v227_v60 = vperm.slane %v1950_v3, 6  ;;  %v2119_v45 = vld [vmem:[%s2496_s1 + $0x18] sm:$0xff] }
  0x22   :  { %1190 = vmatpush.bf16.msra.mxu0 %v1673_v54  ;;  %v47_v0 = vmul.f32 %v2029_v53, %v1945_v2  ;;  %vm52_vm1 = vweird.f32 %v2029_v53  ;;  %vm86_vm5 = vcmp.ge.f32.partialorder %v1857_v20, %v1872_v25  ;;  %vm139_vm6 = vcmp.ge.f32.partialorder %v1862_v21, %v1915_v48 }
  0x23   :  { %1218 = vmatpush.bf16.msra.mxu2 %v1689_v55  ;;  %v2037_v55 = vsub.f32 %v1862_v21, %v1900_v38  ;;  %v2051_v38 = vmul.f32 %v216_v52, %v1995_v32  ;;  %v229_v19 = vmul.f32 %v227_v60, %v2010_v42  ;;  %vm2076_vm3 = vmor %vm51_vm12, %vm52_vm1  ;;  %vm148_vm7 = vcmp.ge.f32.partialorder %v1862_v21, %v1964_v11 }
  0x24   :  { %1204 = vmatpush.bf16.msra.mxu1 %v1681_v63  ;;  %v1734_v63 = vld [vmem:[#allocation3 + $0x1e8] sm:$0xff] }
  0x25   :  { %1232 = vmatpush.bf16.msra.mxu3 %v1697_v1  ;;  %v218_v1 = vmul.f32 %v216_v52, %v2002_v39  ;;  %v230_v23 = vmul.f32 %v2051_v38, %v1925_v50 }
  0x26   :  { %1239 = vmatpush.bf16.msrb.mxu0 %v1712_v61  ;;  %v1798_v61 = vpop.eup %1797 }
  0x27   :  { %1267 = vmatpush.bf16.msrb.mxu2 %v1728_v62  ;;  %v1718_v62 = vld [vmem:[#allocation3 + $0x168] sm:$0xff]  ;;  %v62_v4 = vmul.f32 %v1798_v61, %v1959_v9  ;;  %vm67_vm2 = vweird.f32 %v1798_v61  ;;  %v222_v18 = vsub.f32 1.0, %v218_v1  ;;  %v231_v36 = vmul.f32 %v218_v1, %v1928_v51 }
  0x28   :  { %1253 = vmatpush.bf16.msrb.mxu1 %v1720_v7  ;;  %v220_v7 = vmul.f32 %v215_v58, %v100_v46  ;;  %v238_v46 = vperm.slane %v1950_v3, 7  ;;  %vm2087_vm4 = vmor %vm66_vm14, %vm67_vm2 }
  0x29   :  { %1281 = vmatpush.bf16.msrb.mxu3 %v1736_v8  ;;  %v228_v8 = vmul.f32 %v227_v60, %v2006_v40  ;;  %v224_v58 = vmul.f32 %v222_v18, %v1928_v51  ;;  %v233_v60 = vsub.f32 1.0, %v229_v19 }
  0x2a   :  { %1240 = vmatpush.bf16.msrb.mxu0 %v1711_v16  ;;  %v1725_v16 = vld [vmem:[#allocation3 + $0x1a0] sm:$0xff] }
  0x2b   :  { %1268 = vmatpush.bf16.msrb.mxu2 %v1727_v17  ;;  %v48_v17 = vsub.f32 1.0, %v47_v0  ;;  %v232_v37 = vsub.f32 1.0, %v228_v8  ;;  %v241_v0 = vmul.f32 %v228_v8, %v1932_v56  ;;  %v226_v8 = vadd.f32 %v224_v58, %v220_v7 }
  0x2c   :  { %1254 = vmatpush.bf16.msrb.mxu1 %v1719_v26  ;;  %v63_v26 = vsub.f32 1.0, %v62_v4  ;;  %v235_v18 = vmul.f32 %v233_v60, %v1934_v57 }
  0x2d   :  { %1282 = vmatpush.bf16.msrb.mxu3 %v1735_v27  ;;  %v2065_v27 = vld [vmem:[%s2496_s1 + $0x10] sm:$0xff]  ;;  %v49_v52 = vmul.f32 %v2029_v53, %v48_v17  ;;  %v240_v17 = vmul.f32 %v238_v46, %v2022_v49 }
  0x2e   :  { %1241 = vmatpush.bf16.msrb.mxu0 %v1710_v43  ;;  %v1717_v43 = vld [vmem:[#allocation3 + $0x160] sm:$0xff]  ;;  %v64_v4 = vmul.f32 %v1798_v61, %v63_v26  ;;  %v2500_v2 = vperm.slane %v2065_v27, 7 }
  0x2f   :  { %1269 = vmatpush.bf16.msrb.mxu2 %v1726_v44  ;;  %v1733_v44 = vld [vmem:[#allocation3 + $0x1e0] sm:$0xff]  ;;  %v50_v51 = vadd.f32 %v2029_v53, %v49_v52  ;;  %v244_v52 = vsub.f32 1.0, %v240_v17  ;;  %v253_v60 = vmul.f32 %v240_v17, %v1961_v10  ;;  %v340_v17 = vperm.slane %v2119_v45, 1 }
  0x30   :  { %1255 = vmatpush.bf16.msrb.mxu1 %v1718_v62  ;;  %v234_v62 = vmul.f32 %v232_v37, %v1932_v56  ;;  %v249_v56 = vperm.slane %v2065_v27, 0  ;;  %v65_v26 = vadd.f32 %v1798_v61, %v64_v4 }
  0x31   :  { %1283 = vmatpush.bf16.msrb.mxu3 %v1734_v63  ;;  %v239_v63 = vmul.f32 %v238_v46, %v2018_v29  ;;  %v54_v9 = vsel %vm2076_vm3, %v2029_v53, %v50_v51  ;;  %v237_v46 = vadd.f32 %v235_v18, %v231_v36 }
  0x32   :  { %1242 = vmatpush.bf16.msrb.mxu0 %v1709_v13  ;;  %v2093_v37 = vadd.f32 %v234_v62, %v230_v23  ;;  %v242_v13 = vmul.f32 %v229_v19, %v1934_v57  ;;  %v250_v7 = vmul.f32 %v249_v56, %v2026_v30  ;;  %v59_v58 = vsel %vm2012_vm15, %v1988_v28, %v54_v9  ;;  %v1724_v9 = vld [vmem:[#allocation3 + $0x198] sm:$0xff] }
  0x33   :  { %1270 = vmatpush.bf16.msrb.mxu2 %v1725_v16  ;;  %v243_v16 = vsub.f32 1.0, %v239_v63  ;;  %v69_v23 = vsel %vm2087_vm4, %v1798_v61, %v65_v26  ;;  %v2107_v19 = vmul.f32 %v249_v56, %v2037_v55  ;;  %v76_v36 = vmul.f32 %v59_v58, %v1857_v20 }
  0x34   :  { %1256 = vmatpush.bf16.msrb.mxu1 %v1717_v43  ;;  %v74_v53 = vsel %vm2031_vm0, %v1991_v31, %v69_v23  ;;  %v246_v43 = vmul.f32 %v244_v52, %v1961_v10  ;;  %v254_v1 = vsub.f32 1.0, %v250_v7  ;;  %v2499_v62 = vperm.slane %v2065_v27, 1 }
  0x35   :  { %1284 = vmatpush.bf16.msrb.mxu3 %v1733_v44  ;;  %v245_v57 = vmul.f32 %v243_v16, %v1937_v59  ;;  %v252_v44 = vmul.f32 %v239_v63, %v1937_v59  ;;  %v77_v28 = vmul.f32 %v74_v53, %v1862_v21  ;;  %v78_v4 = vpack.c.bf16 %v76_v36, %v76_v36  ;;  %v1708_v16 = vld [vmem:[#allocation3 + $0x118] sm:$0xff] }
  0x36   :  { %v248_v54 = vadd.f32 %v246_v43, %v242_v13  ;;  %v255_v31 = vsub.f32 1.0, %v2107_v19  ;;  %v256_v59 = vmul.f32 %v254_v1, %v1969_v14  ;;  %v263_v63 = vmul.f32 %v250_v7, %v1969_v14  ;;  %1243 = vmatpush.bf16.msrb.mxu0 %v1708_v16  ;;  %v2161_v16 = vld [vmem:[%s2496_s1 + $0x20] sm:$0xff] }
  0x37   :  { %v247_v61 = vadd.f32 %v245_v57, %v241_v0  ;;  %v79_v51 = vpack.c.bf16 %v77_v28, %v77_v28  ;;  %83 = vst [vmem:[#allocation2] sm:$0xf] %v78_v4  ;;  %v2131_v10 = vmul.f32 %v2499_v62, %v2041_v34  ;;  %v329_v0 = vperm.slane %v2119_v45, 0  ;;  %1271 = vmatpush.bf16.msrb.mxu2 %v1724_v9 }
  0x38   :  { %v257_v18 = vmul.f32 %v255_v31, %v1972_v15  ;;  %v258_v56 = vadd.f32 %v256_v59, %v252_v44  ;;  %v328_v14 = vmul.f32 %v2500_v2, %v1986_v24  ;;  %v351_v26 = vperm.slane %v2119_v45, 2 }
  0x39   :  { %84 = vst [vmem:[#allocation2 + $0x24] sm:$0xf] %v79_v51  ;;  %v2502_v13 = vperm.slane %v2119_v45, 3  ;;  %v265_v7 = vsub.f32 1.0, %v2131_v10  ;;  %v2144_v58 = vmul.f32 %v329_v0, %v1995_v32  ;;  %v331_v23 = vmul.f32 %v329_v0, %v2002_v39 }
  0x3a   :  { %v2140_v52 = vadd.f32 %v257_v18, %v253_v60  ;;  %v333_v57 = vmul.f32 %v328_v14, %v226_v8  ;;  %v341_v53 = vmul.f32 %v340_v17, %v2006_v40  ;;  %v342_v36 = vmul.f32 %v340_v17, %v2010_v42 }
  0x3b   :  { %v352_v43 = vmul.f32 %v351_v26, %v2018_v29  ;;  %v267_v44 = vmul.f32 %v265_v7, %v1978_v22  ;;  %v335_v28 = vsub.f32 1.0, %v331_v23  ;;  %v343_v60 = vmul.f32 %v2144_v58, %v2093_v37 }
  0x3c   :  { %v344_v1 = vmul.f32 %v331_v23, %v237_v46  ;;  %v345_v4 = vsub.f32 1.0, %v341_v53  ;;  %v346_v31 = vsub.f32 1.0, %v342_v36  ;;  %v2154_v51 = vmul.f32 %v351_v26, %v2022_v49 }
  0x3d   :  { %v354_v8 = vmul.f32 %v341_v53, %v247_v61  ;;  %v2156_v59 = vadd.f32 %v267_v44, %v263_v63  ;;  %v337_v18 = vmul.f32 %v335_v28, %v237_v46  ;;  %v355_v0 = vmul.f32 %v342_v36, %v248_v54 }
  0x3e   :  { %v356_v17 = vsub.f32 1.0, %v352_v43  ;;  %v1342_v14 = vld [vmem:[#allocation2] sm:$0xf]  ;;  %v347_v7 = vmul.f32 %v345_v4, %v247_v61  ;;  %v348_v23 = vmul.f32 %v346_v31, %v248_v54  ;;  %v357_v9 = vsub.f32 1.0, %v2154_v51 }
  0x3f   :  { %v2167_v26 = vmul.f32 %v2502_v13, %v2026_v30  ;;  %v339_v53 = vadd.f32 %v337_v18, %v333_v57  ;;  %v365_v36 = vmul.f32 %v352_v43, %v258_v56  ;;  %v428_v44 = vperm.slane %v2161_v16, 1 }
  0x40   :  { %v1668_v63 = vld [vmem:[#allocation2 + $0x20] sm:$0xf0]  ;;  %v358_v46 = vmul.f32 %v356_v17, %v258_v56  ;;  %v349_v62 = vadd.f32 %v347_v7, %v343_v60  ;;  %v350_v2 = vadd.f32 %v348_v23, %v344_v1  ;;  %v359_v12 = vmul.f32 %v357_v9, %v2140_v52 }
  0x41   :  { %v1343_v28 = vor.u32 %v1668_v63, %v1342_v14  ;;  %v367_v54 = vsub.f32 1.0, %v2167_v26  ;;  %v430_v4 = vmul.f32 %v428_v44, %v1986_v24  ;;  %v431_v31 = vperm.slane %v2161_v16, 2 }
  0x42   :  { %v360_v61 = vadd.f32 %v358_v46, %v354_v8  ;;  %v2174_v13 = vadd.f32 %v359_v12, %v355_v0  ;;  %v442_v57 = vperm.slane %v2161_v16, 3  ;;  %v453_v56 = vperm.slane %v2161_v16, 4 }
  0x43   :  { %1191 = vmatmul.bf16.vlgmr.msra.gmra.mxu0 %v1343_v28  ;;  %v369_v43 = vmul.f32 %v367_v54, %v2156_v59  ;;  %v432_v60 = vmul.f32 %v431_v31, %v1995_v32  ;;  %v433_v1 = vmul.f32 %v431_v31, %v2002_v39  ;;  %v435_v8 = vmul.f32 %v430_v4, %v339_v53 }
  0x44   :  { %v443_v24 = vmul.f32 %v442_v57, %v2006_v40  ;;  %v2185_v18 = vmul.f32 %v442_v57, %v2010_v42  ;;  %v2190_v12 = vmul.f32 %v453_v56, %v2018_v29  ;;  %v1316_v0 = vsel %vm86_vm5, 1.0, %v1830_v35 }
  0x45   :  { %v2193_v17 = vadd.f32 %v369_v43, %v365_v36  ;;  %v437_v14 = vsub.f32 1.0, %v433_v1  ;;  %v445_v7 = vmul.f32 %v432_v60, %v349_v62  ;;  %v446_v32 = vmul.f32 %v433_v1, %v350_v2 }
  0x46   :  { %v447_v23 = vsub.f32 1.0, %v443_v24  ;;  %v448_v39 = vsub.f32 1.0, %v2185_v18  ;;  %v456_v9 = vmul.f32 %v443_v24, %v360_v61  ;;  %v458_v40 = vsub.f32 1.0, %v2190_v12 }
  0x47   :  { %v439_v42 = vmul.f32 %v437_v14, %v350_v2  ;;  %v99_v63 = vsub.f32 %v1316_v0, %v1903_v41  ;;  %v191_v29 = vsub.f32 %v1857_v20, %v1872_v25  ;;  %v221_v53 = vsub.f32 1.0, %v2051_v38 }
  0x48   :  { %v449_v46 = vmul.f32 %v447_v23, %v360_v61  ;;  %v450_v36 = vmul.f32 %v448_v39, %v2174_v13  ;;  %v460_v28 = vmul.f32 %v458_v40, %v2193_v17  ;;  %v334_v54 = vsub.f32 1.0, %v2144_v58  ;;  %v1707_v40 = vld [vmem:[#allocation3 + $0x110] sm:$0xff] }
  0x49   :  { %v2206_v4 = vsub.f32 %v1957_v6, %v1998_v33  ;;  %v441_v31 = vadd.f32 %v439_v42, %v435_v8  ;;  %v2511_v2 = vperm.slane %v1950_v3, 4  ;;  %v223_v57 = vmul.f32 %v221_v53, %v1925_v50  ;;  %v1716_v50 = vld [vmem:[#allocation3 + $0x158] sm:$0xff]  ;;  %1244 = vmatpush.bf16.msrb.mxu0 %v1707_v40 }
  0x4a   :  { %v451_v25 = vadd.f32 %v449_v46, %v445_v7  ;;  %v452_v43 = vadd.f32 %v450_v36, %v446_v32  ;;  %v462_v38 = vadd.f32 %v460_v28, %v456_v9  ;;  %v2512_v61 = vperm.slane %v2065_v27, 7  ;;  %v1732_v7 = vld [vmem:[#allocation3 + $0x1d8] sm:$0xff]  ;;  %1257 = vmatpush.bf16.msrb.mxu1 %v1716_v50  ;;  %v1731_v28 = vld [vmem:[#allocation3 + $0x1d0] sm:$0xff] }
  0x4b   :  { %v214_v41 = vmul.f32 %v2511_v2, %v191_v29  ;;  %v336_v0 = vmul.f32 %v334_v54, %v2093_v37  ;;  %v436_v58 = vsub.f32 1.0, %v432_v60  ;;  %v1329_v14 = vsel %vm139_vm6, 1.0, %v1830_v35  ;;  %v1723_v37 = vld [vmem:[#allocation3 + $0x190] sm:$0xff]  ;;  %1285 = vmatpush.bf16.msrb.mxu3 %v1732_v7 }
  0x4c   :  { %v327_v1 = vmul.f32 %v2512_v61, %v191_v29  ;;  %v1748_v6 = vpack.c.bf16 %v452_v43, %v441_v31  ;;  %v1753_v8 = vpack.c.bf16 %v462_v38, %v451_v25  ;;  %v429_v23 = vmul.f32 %v428_v44, %v191_v29  ;;  %1272 = vmatpush.bf16.msrb.mxu2 %v1723_v37 }
  0x4d   :  { %v219_v24 = vmul.f32 %v214_v41, %v99_v63  ;;  %v438_v39 = vmul.f32 %v436_v58, %v349_v62  ;;  %v1331_v9 = vsel %vm148_vm7, 1.0, %v1830_v35  ;;  %v145_v60 = vsub.f32 %v1954_v5, %v1329_v14  ;;  %v1715_v62 = vld [vmem:[#allocation3 + $0x150] sm:$0xff]  ;;  %v1706_v41 = vld [vmem:[#allocation3 + $0x108] sm:$0xff] }
  0x4e   :  { %1780 = vst [vmem:[#allocation2 + $0x28] sm:$0xff] %v1748_v6   ;;  %v2222_v42 = vperm.slane %v1950_v3, 0  ;;  %v2226_v63 = vsub.f32 %v1862_v21, %v1912_v47  ;;  %v2230_v53 = vsub.f32 %v1862_v21, %v1915_v48  ;;  %v2232_v29 = vsub.f32 %v1329_v14, %v1331_v9  ;;  %1258 = vmatpush.bf16.msrb.mxu1 %v1715_v62 }
  0x4f   :  { %v225_v32 = vadd.f32 %v223_v57, %v219_v24  ;;  %1781 = vst [vmem:[#allocation2 + $0x8] sm:$0xff] %v1753_v8   ;;  %v271_v46 = vperm.slane %v2065_v27, 2  ;;  %v2513_v5 = vperm.slane %v2119_v45, 3  ;;  %v2514_v47 = vperm.slane %v2065_v27, 1  ;;  %v1722_v57 = vld [vmem:[#allocation3 + $0x188] sm:$0xff]  ;;  %1286 = vmatpush.bf16.msrb.mxu3 %v1731_v28  ;;  %1245 = vmatpush.bf16.msrb.mxu0 %v1706_v41  ;;  %v1729_v41 = vld [vmem:[#allocation3 + $0x1c0] sm:$0xff] }
  0x50   :  { %vm157_vm8 = vcmp.ge.f32.partialorder %v1862_v21, %v2222_v42  ;;  %v264_v31 = vmul.f32 %v2107_v19, %v1972_v15  ;;  %v373_v2 = vperm.slane %v2119_v45, 4  ;;  %v366_v61 = vmul.f32 %v2154_v51, %v2140_v52  ;;  %v1730_v51 = vld [vmem:[#allocation3 + $0x1c8] sm:$0xff]  ;;  %1273 = vmatpush.bf16.msrb.mxu2 %v1722_v57 }
  0x51   :  { %v332_v44 = vmul.f32 %v327_v1, %v225_v32  ;;  %v364_v36 = vmul.f32 %v2513_v5, %v2037_v55  ;;  %v262_v54 = vmul.f32 %v2514_v47, %v2226_v63  ;;  %v2247_v43 = vsel %vm157_vm8, 1.0, %v1830_v35  ;;  %v1705_v32 = vld [vmem:[#allocation3 + $0x100] sm:$0xff] }
  0x52   :  { %v2250_v38 = vmul.f32 %v271_v46, %v2230_v53  ;;  %v2255_v1 = vsub.f32 %v1331_v9, %v2247_v43  ;;  %v2260_v24 = vmul.f32 %v373_v2, %v2226_v63  ;;  %v455_v52 = vmul.f32 %v453_v56, %v2022_v49  ;;  %v1721_v9 = vld [vmem:[#allocation3 + $0x180] sm:$0xff]  ;;  %v1744_v56 = vld [vmem:[#allocation3 + $0x238] sm:$0xff] }
  0x53   :  { %v338_v25 = vadd.f32 %v336_v0, %v332_v44  ;;  %v266_v15 = vsub.f32 1.0, %v262_v54  ;;  %v368_v19 = vsub.f32 1.0, %v364_v36  ;;  %v1714_v0 = vld [vmem:[#allocation3 + $0x148] sm:$0xff]  ;;  %v275_v6 = vmul.f32 %v262_v54, %v145_v60  ;;  %v1713_v44 = vld [vmem:[#allocation3 + $0x140] sm:$0xff]  ;;  %1287 = vmatpush.bf16.msrb.mxu3 %v1730_v51  ;;  %1246 = vmatpush.bf16.msrb.mxu0 %v1705_v32 }
  0x54   :  { %v277_v8 = vsub.f32 1.0, %v2250_v38  ;;  %v457_v50 = vmul.f32 %v2185_v18, %v2174_v13  ;;  %v464_v7 = vperm.slane %v2161_v16, 5  ;;  %vm156_vm9 = vcmp.ge.f32.partialorder %v1857_v20, %v2222_v42  ;;  %1259 = vmatpush.bf16.msrb.mxu1 %v1714_v0  ;;  %1274 = vmatpush.bf16.msrb.mxu2 %v1721_v9 }
  0x55   :  { %v434_v58 = vmul.f32 %v429_v23, %v338_v25  ;;  %v268_v14 = vmul.f32 %v266_v15, %v145_v60  ;;  %v1669_v23 = vld [vmem:[#allocation2 + $0x28] sm:$0xf0]  ;;  %v379_v49 = vsub.f32 1.0, %v2260_v24  ;;  %v2274_v60 = vsel %vm156_vm9, 1.0, %v1830_v35 }
  0x56   :  { %v279_v37 = vmul.f32 %v277_v8, %v2232_v29  ;;  %v1350_v13 = vld [vmem:[#allocation2 + $0x8] sm:$0xf]  ;;  %v2277_v62 = vmul.f32 %v464_v7, %v2037_v55  ;;  %v2281_v5 = vsub.f32 %v1998_v33, %v2274_v60  ;;  %v2291_v55 = vsub.f32 %v1857_v20, %v1964_v11 }
  0x57   :  { %v440_v40 = vadd.f32 %v438_v39, %v434_v58  ;;  %v270_v18 = vadd.f32 %v268_v14, %v264_v31  ;;  %v2285_v39 = vsub.f32 %v1857_v20, %v1915_v48  ;;  %v1351_v28 = vor.u32 %v1669_v23, %v1350_v13  ;;  %1295 = vmatpush.bf16.msra.mxu0 %v1744_v56 }
  0x58   :  { %v2287_v54 = vadd.f32 %v279_v37, %v275_v6  ;;  %v459_v25 = vsub.f32 1.0, %v455_v52  ;;  %v470_v15 = vsub.f32 1.0, %v2277_v62  ;;  %v282_v0 = vperm.slane %v2065_v27, 3  ;;  %1260 = vmatpush.bf16.msrb.mxu1 %v1713_v44  ;;  %1288 = vmatpush.bf16.msrb.mxu3 %v1729_v41 }
  0x59   :  { %v519_v47 = vpack.c.bf16 %v440_v40, %v440_v40  ;;  %v370_v31 = vmul.f32 %v368_v19, %v270_v18  ;;  %v377_v57 = vmul.f32 %v364_v36, %v270_v18  ;;  %v272_v33 = vmul.f32 %v271_v46, %v2285_v39  ;;  %1219 = vmatmul.bf16.vlgmr.msra.gmra.mxu2 %v1351_v28 }
  0x5a   :  { %v381_v48 = vmul.f32 %v379_v49, %v2287_v54  ;;  %v384_v58 = vperm.slane %v2119_v45, 5  ;;  %v274_v36 = vmul.f32 %v2131_v10, %v1978_v22  ;;  %v374_v46 = vmul.f32 %v373_v2, %v2041_v34  ;;  %v1344_v49 = vld [vmem:[#allocation2 + $0x24] sm:$0xf0] }
  0x5b   :  { %521 = vst [vmem:[#allocation2 + $0x4] sm:$0xf] %v519_v47  ;;  %v372_v6 = vadd.f32 %v370_v31, %v366_v61  ;;  %v276_v19 = vsub.f32 1.0, %v272_v33  ;;  %v283_v51 = vmul.f32 %v282_v0, %v2291_v55  ;;  %v285_v14 = vmul.f32 %v272_v33, %v2206_v4 }
  0x5c   :  { %v2303_v8 = vadd.f32 %v381_v48, %v377_v57  ;;  %v2310_v61 = vmul.f32 %v384_v58, %v2285_v39  ;;  %v378_v10 = vsub.f32 1.0, %v374_v46  ;;  %v376_v40 = vmul.f32 %v2167_v26, %v2156_v59 }
  0x5d   :  { %v461_v32 = vmul.f32 %v459_v25, %v372_v6  ;;  %v468_v9 = vmul.f32 %v455_v52, %v372_v6  ;;  %v278_v22 = vmul.f32 %v276_v19, %v2206_v4  ;;  %v287_v2 = vsub.f32 1.0, %v283_v51 }
  0x5e   :  { %v472_v23 = vmul.f32 %v470_v15, %v2303_v8  ;;  %v465_v37 = vmul.f32 %v464_v7, %v2026_v30  ;;  %v389_v18 = vsub.f32 1.0, %v2310_v61  ;;  %v475_v44 = vperm.slane %v2161_v16, 6 }
  0x5f   :  { %v463_v56 = vadd.f32 %v461_v32, %v457_v50  ;;  %v280_v13 = vadd.f32 %v278_v22, %v274_v36  ;;  %v289_v52 = vmul.f32 %v287_v2, %v2281_v5  ;;  %v2321_v47 = vperm.slane %v1950_v3, 1 }
  0x60   :  { %v474_v28 = vadd.f32 %v472_v23, %v468_v9  ;;  %v469_v4 = vsub.f32 1.0, %v465_v37  ;;  %v2326_v30 = vmul.f32 %v475_v44, %v2041_v34  ;;  %v2329_v59 = vperm.slane %v1950_v3, 2 }
  0x61   :  { %v380_v31 = vmul.f32 %v378_v10, %v280_v13  ;;  %v387_v57 = vmul.f32 %v374_v46, %v280_v13  ;;  %v291_v7 = vadd.f32 %v289_v52, %v285_v14  ;;  %vm165_vm10 = vcmp.ge.f32.partialorder %v1857_v20, %v2321_v47 }
  0x62   :  { %v1664_v41 = vld [vmem:[#allocation2 + $0x4] sm:$0xf]  ;;  %v1758_v50 = vpack.c.bf16 %v474_v28, %v463_v56  ;;  %v467_v33 = vmul.f32 %v2190_v12, %v2193_v17  ;;  %vm166_vm11 = vcmp.ge.f32.partialorder %v1862_v21, %v2321_v47  ;;  %v1334_v48 = vsel %vm165_vm10, 1.0, %v1830_v35 }
  0x63   :  { %v1347_v26 = vor.u32 %v1664_v41, %v1344_v49  ;;  %v382_v25 = vadd.f32 %v380_v31, %v376_v40  ;;  %v391_v34 = vmul.f32 %v389_v18, %v291_v7  ;;  %v480_v15 = vsub.f32 1.0, %v2326_v30 }
  0x64   :  { %1782 = vst [vmem:[#allocation2 + $0x30] sm:$0xff] %v1758_v50   ;;  %v2340_v6 = vsel %vm166_vm11, 1.0, %v1830_v35  ;;  %vm174_vm12 = vcmp.ge.f32.partialorder %v1857_v20, %v2329_v59  ;;  %v171_v12 = vsub.f32 %v2274_v60, %v1334_v48  ;;  %v2356_v32 = vsub.f32 %v1862_v21, %v1964_v11 }
  0x65   :  { %1205 = vmatmul.bf16.vlgmr.msra.gmra.mxu1 %v1347_v26  ;;  %v471_v36 = vmul.f32 %v469_v4, %v382_v25  ;;  %v478_v19 = vmul.f32 %v465_v37, %v382_v25  ;;  %v2346_v17 = vsel %vm174_vm12, 1.0, %v1830_v35  ;;  %v2348_v46 = vadd.f32 %v391_v34, %v387_v57  ;;  %v1665_v37 = vld [vmem:[#allocation2 + $0xc] sm:$0xf] }
  0x66   :  { %v2352_v14 = vsub.f32 %v2247_v43, %v2340_v6  ;;  %v2360_v9 = vsub.f32 %v1857_v20, %v2222_v42  ;;  %v2363_v60 = vsub.f32 %v1334_v48, %v2346_v17  ;;  %v2367_v10 = vsub.f32 %v1862_v21, %v2222_v42 }
  0x67   :  { %v473_v22 = vadd.f32 %v471_v36, %v467_v33  ;;  %v2371_v43 = vsub.f32 %v1857_v20, %v2321_v47  ;;  %v482_v23 = vmul.f32 %v480_v15, %v2348_v46  ;;  %v284_v11 = vmul.f32 %v282_v0, %v2356_v32 }
  0x68   :  { %v286_v2 = vmul.f32 %v2250_v38, %v2232_v29  ;;  %v293_v40 = vperm.slane %v2065_v27, 4  ;;  %v296_v49 = vmul.f32 %v283_v51, %v2281_v5  ;;  %v304_v56 = vperm.slane %v2065_v27, 5 }
  0x69   :  { %v386_v21 = vmul.f32 %v384_v58, %v2230_v53  ;;  %v395_v20 = vperm.slane %v2119_v45, 6  ;;  %v484_v42 = vadd.f32 %v482_v23, %v478_v19  ;;  %v288_v13 = vsub.f32 1.0, %v284_v11 }
  0x6a   :  { %v294_v0 = vmul.f32 %v293_v40, %v2360_v9  ;;  %v2386_v18 = vmul.f32 %v293_v40, %v2367_v10  ;;  %v297_v38 = vmul.f32 %v284_v11, %v2255_v1  ;;  %v2392_v5 = vmul.f32 %v304_v56, %v2371_v43 }
  0x6b   :  { %v1352_v29 = vld [vmem:[#allocation2 + $0x2c] sm:$0xf0]  ;;  %v390_v51 = vsub.f32 1.0, %v386_v21  ;;  %v396_v58 = vmul.f32 %v395_v20, %v2291_v55  ;;  %v1763_v52 = vpack.c.bf16 %v484_v42, %v473_v22  ;;  %v290_v4 = vmul.f32 %v288_v13, %v2255_v1 }
  0x6c   :  { %v1355_v28 = vor.u32 %v1665_v37, %v1352_v29  ;;  %v298_v41 = vsub.f32 1.0, %v294_v0  ;;  %v299_v31 = vsub.f32 1.0, %v2386_v18  ;;  %v307_v57 = vmul.f32 %v294_v0, %v171_v12 }
  0x6d   :  { %v309_v26 = vsub.f32 1.0, %v2392_v5  ;;  %v2399_v50 = vmul.f32 %v395_v20, %v2356_v32  ;;  %1783 = vst [vmem:[#allocation2 + $0x10] sm:$0xff] %v1763_v52   ;;  %v292_v25 = vadd.f32 %v290_v4, %v286_v2  ;;  %v388_v48 = vmul.f32 %v2260_v24, %v2287_v54  ;;  %v2414_v24 = vld [vmem:[%s2496_s1 + $0x28] sm:$0x3] }
  0x6e   :  { %1233 = vmatmul.bf16.vlgmr.msra.gmra.mxu3 %v1355_v28  ;;  %v300_v33 = vmul.f32 %v298_v41, %v171_v12  ;;  %v400_v34 = vsub.f32 1.0, %v396_v58  ;;  %v301_v15 = vmul.f32 %v299_v31, %v2352_v14  ;;  %v406_v19 = vperm.slane %v2119_v45, 7 }
  0x6f   :  { %v311_v1 = vmul.f32 %v309_v26, %v2363_v60  ;;  %v401_v36 = vsub.f32 1.0, %v2399_v50  ;;  %v392_v23 = vmul.f32 %v390_v51, %v292_v25  ;;  %v398_v11 = vmul.f32 %v2310_v61, %v291_v7 }
  0x70   :  { %v302_v22 = vadd.f32 %v300_v33, %v296_v49  ;;  %v477_v12 = vmul.f32 %v475_v44, %v2226_v63  ;;  %v2416_v54 = vadd.f32 %v301_v15, %v297_v38  ;;  %v399_v40 = vmul.f32 %v386_v21, %v292_v25  ;;  %v1670_v49 = vld [vmem:[#allocation2 + $0x30] sm:$0xf0]  ;;  %v1743_v25 = vld [vmem:[#allocation3 + $0x230] sm:$0xff] }
  0x71   :  { %v2418_v2 = vadd.f32 %v311_v1, %v307_v57  ;;  %v2423_v37 = vmul.f32 %v406_v19, %v2360_v9  ;;  %v394_v61 = vadd.f32 %v392_v23, %v388_v48  ;;  %v479_v63 = vmul.f32 %v2277_v62, %v2303_v8  ;;  %1296 = vmatpush.bf16.msra.mxu0 %v1743_v25 }
  0x72   :  { %v402_v7 = vmul.f32 %v400_v34, %v302_v22  ;;  %v481_v44 = vsub.f32 1.0, %v477_v12  ;;  %v403_v20 = vmul.f32 %v401_v36, %v2416_v54  ;;  %v409_v42 = vmul.f32 %v396_v58, %v302_v22  ;;  %v1742_v22 = vld [vmem:[#allocation3 + $0x228] sm:$0xff] }
  0x73   :  { %v411_v13 = vsub.f32 1.0, %v2423_v37  ;;  %v486_v0 = vperm.slane %v2161_v16, 7  ;;  %v489_v38 = vmul.f32 %v2326_v30, %v2348_v46  ;;  %v497_v51 = vperm.slane %v2414_v24, 0  ;;  %v1799_v30 = vld [vmem:[%s2495_s0 + $0x8] sm:$0xff] }
  0x74   :  { %v404_v21 = vadd.f32 %v402_v7, %v398_v11  ;;  %v483_v29 = vmul.f32 %v481_v44, %v394_v61  ;;  %v1358_v28 = vld [vmem:[#allocation2 + $0x10] sm:$0xf]  ;;  %v2433_v52 = vadd.f32 %v403_v20, %v399_v40  ;;  %v490_v41 = vmul.f32 %v477_v12, %v394_v61 }
  0x75   :  { %v413_v62 = vmul.f32 %v411_v13, %v2418_v2  ;;  %v487_v8 = vmul.f32 %v486_v0, %v2285_v39  ;;  %v2438_v58 = vmul.f32 %v486_v0, %v2230_v53  ;;  %v1359_v4 = vor.u32 %v1670_v49, %v1358_v28  ;;  %1297 = vmatpush.bf16.msra.mxu0 %v1742_v22 }
  0x76   :  { %v2441_v31 = vmul.f32 %v497_v51, %v2291_v55  ;;  %vm175_vm13 = vcmp.ge.f32.partialorder %v1799_v30, %v2329_v59  ;;  %v182_v55 = vperm.slane %v1950_v3, 3  ;;  %v210_v48 = vsub.f32 %v1799_v30, %v2321_v47 }
  0x77   :  { %v2447_v46 = vadd.f32 %v413_v62, %v409_v42  ;;  %v491_v57 = vsub.f32 1.0, %v487_v8  ;;  %v492_v26 = vsub.f32 1.0, %v2438_v58  ;;  %v500_v39 = vmul.f32 %v487_v8, %v404_v21  ;;  %1247 = vmatmul.bf16.vlgmr.msrb.gmra.mxu0 %v1359_v4  ;;  %v1800_v62 = vld [vmem:[%s2495_s0] sm:$0xff] }
  0x78   :  { %v502_v53 = vsub.f32 1.0, %v2441_v31  ;;  %v1337_v33 = vsel %vm175_vm13, 1.0, %v1830_v35  ;;  %v485_v34 = vadd.f32 %v483_v29, %v479_v63  ;;  %v212_v36 = vsub.f32 %v1799_v30, %v2329_v59 }
  0x79   :  { %v493_v15 = vmul.f32 %v491_v57, %v404_v21  ;;  %v494_v1 = vmul.f32 %v492_v26, %v2433_v52  ;;  %v181_v11 = vsub.f32 %v2340_v6, %v1337_v33  ;;  %vm184_vm14 = vcmp.ge.f32.partialorder %v1799_v30, %v182_v55 }
  0x7a   :  { %v504_v23 = vmul.f32 %v502_v53, %v2447_v46  ;;  %v306_v12 = vmul.f32 %v304_v56, %v210_v48  ;;  %v1339_v47 = vsel %vm184_vm14, 1.0, %v1830_v35  ;;  %v315_v61 = vperm.slane %v2065_v27, 6  ;;  %v1741_v56 = vld [vmem:[#allocation3 + $0x220] sm:$0xff] }
  0x7b   :  { %v495_v40 = vadd.f32 %v493_v15, %v489_v38  ;;  %v496_v3 = vadd.f32 %v494_v1, %v490_v41  ;;  %v308_v63 = vmul.f32 %v2386_v18, %v2352_v14  ;;  %v190_v20 = vsub.f32 %v1337_v33, %v1339_v47  ;;  %1298 = vmatpush.bf16.msra.mxu0 %v1741_v56 }
  0x7c   :  { %v506_v7 = vadd.f32 %v504_v23, %v500_v39  ;;  %v310_v44 = vsub.f32 1.0, %v306_v12  ;;  %v317_v42 = vmul.f32 %v315_v61, %v212_v36  ;;  %v408_v6 = vmul.f32 %v406_v19, %v2367_v10  ;;  %v1666_v39 = vld [vmem:[#allocation2 + $0x14] sm:$0xf] }
  0x7d   :  { %v1768_v49 = vpack.c.bf16 %v496_v3, %v485_v34  ;;  %v417_v21 = vperm.slane %v2161_v16, 0  ;;  %v499_v27 = vmul.f32 %v497_v51, %v2356_v32  ;;  %v319_v29 = vmul.f32 %v306_v12, %v181_v11  ;;  %v1740_v51 = vld [vmem:[#allocation3 + $0x218] sm:$0xff] }
  0x7e   :  { %v1773_v13 = vpack.c.bf16 %v506_v7, %v495_v40  ;;  %v312_v0 = vmul.f32 %v310_v44, %v181_v11  ;;  %v321_v38 = vsub.f32 1.0, %v317_v42  ;;  %v412_v14 = vsub.f32 1.0, %v408_v6 }
  0x7f   :  { %1784 = vst [vmem:[#allocation2 + $0x38] sm:$0xff] %v1768_v49   ;;  %v508_v18 = vperm.slane %v2414_v24, 1  ;;  %v410_v45 = vmul.f32 %v2399_v50, %v2416_v54  ;;  %v419_v19 = vmul.f32 %v417_v21, %v210_v48  ;;  %vm183_vm15 = vcmp.ge.f32.partialorder %v1800_v62, %v182_v55  ;;  %1299 = vmatpush.bf16.msra.mxu0 %v1740_v51 }
  0x80   :  { %1785 = vst [vmem:[#allocation2 + $0x18] sm:$0xff] %v1773_v13   ;;  %v314_v28 = vadd.f32 %v312_v0, %v308_v63  ;;  %v323_v16 = vmul.f32 %v321_v38, %v190_v20  ;;  %v1338_v8 = vsel %vm183_vm15, 1.0, %v1830_v35  ;;  %v211_v24 = vsub.f32 %v1800_v62, %v2329_v59  ;;  %v1739_v35 = vld [vmem:[#allocation3 + $0x210] sm:$0xff]  ;;  %v1737_v63 = vld [vmem:[#allocation3 + $0x200] sm:$0xff] }
  0x81   :  { %v510_v32 = vmul.f32 %v508_v18, %v2367_v10  ;;  %v423_v41 = vsub.f32 1.0, %v419_v19  ;;  %v503_v30 = vsub.f32 1.0, %v499_v27  ;;  %v189_v54 = vsub.f32 %v2346_v17, %v1338_v8 }
  0x82   :  { %v414_v4 = vmul.f32 %v412_v14, %v314_v28  ;;  %v325_v57 = vadd.f32 %v323_v16, %v319_v29  ;;  %v421_v50 = vmul.f32 %v408_v6, %v314_v28  ;;  %v316_v26 = vmul.f32 %v315_v61, %v211_v24 }
  0x83   :  { %v501_v53 = vmul.f32 %v2438_v58, %v2433_v52  ;;  %v418_v10 = vmul.f32 %v417_v21, %v2371_v43  ;;  %v514_v55 = vsub.f32 1.0, %v510_v32  ;;  %v318_v59 = vmul.f32 %v2392_v5, %v2363_v60  ;;  %1300 = vmatpush.bf16.msra.mxu0 %v1739_v35  ;;  %v1738_v60 = vld [vmem:[#allocation3 + $0x208] sm:$0xff] }
  0x84   :  { %v416_v25 = vadd.f32 %v414_v4, %v410_v45  ;;  %v425_v33 = vmul.f32 %v423_v41, %v325_v57  ;;  %v320_v48 = vsub.f32 1.0, %v316_v26  ;;  %v509_v36 = vmul.f32 %v508_v18, %v2360_v9 }
  0x85   :  { %v422_v58 = vsub.f32 1.0, %v418_v10  ;;  %v420_v12 = vmul.f32 %v2423_v37, %v2418_v2  ;;  %v511_v49 = vmul.f32 %v2441_v31, %v2447_v46 }
  0x86   :  { %v1671_v34 = vld [vmem:[#allocation2 + $0x38] sm:$0xf0]  ;;  %v1360_v15 = vld [vmem:[#allocation2 + $0x34] sm:$0xf0]  ;;  %v505_v1 = vmul.f32 %v503_v30, %v416_v25  ;;  %v512_v17 = vmul.f32 %v499_v27, %v416_v25  ;;  %v427_v11 = vadd.f32 %v425_v33, %v421_v50  ;;  %v322_v52 = vmul.f32 %v320_v48, %v189_v54 }
  0x87   :  { %v1366_v22 = vld [vmem:[#allocation2 + $0x18] sm:$0xf]  ;;  %v1363_v23 = vor.u32 %v1666_v39, %v1360_v15  ;;  %v513_v7 = vsub.f32 1.0, %v509_v36  ;;  %1301 = vmatpush.bf16.msra.mxu0 %v1738_v60  ;;  %v1667_v42 = vld [vmem:[#allocation2 + $0x1c] sm:$0xf] }
  0x88   :  { %v1367_v43 = vor.u32 %v1671_v34, %v1366_v22  ;;  %v507_v40 = vadd.f32 %v505_v1, %v501_v53  ;;  %v516_v3 = vmul.f32 %v514_v55, %v427_v11  ;;  %v324_v5 = vadd.f32 %v322_v52, %v318_v59 }
  0x89   :  { %1261 = vmatmul.bf16.vlgmr.msrb.gmra.mxu1 %v1363_v23 }
  0x8a   :  { %1275 = vmatmul.bf16.vlgmr.msrb.gmra.mxu2 %v1367_v43  ;;  %v518_v47 = vadd.f32 %v516_v3, %v512_v17  ;;  %v424_v61 = vmul.f32 %v422_v58, %v324_v5 }
  0x8b   :  { %1302 = vmatpush.bf16.msra.mxu0 %v1737_v63 }
  0x8c   :  { %v1778_v9 = vpack.c.bf16 %v518_v47, %v507_v40  ;;  %v426_v44 = vadd.f32 %v424_v61, %v420_v12 }
  0x8e   :  { %1786 = vst [vmem:[#allocation2 + $0x40] sm:$0xff] %v1778_v9   ;;  %v515_v20 = vmul.f32 %v513_v7, %v426_v44 }
  0x90   :  { %v517_v2 = vadd.f32 %v515_v20, %v511_v49 }
  0x92   :  { %v547_v37 = vpack.c.bf16 %v517_v2, %v517_v2 }
  0x94   :  { %549 = vst [vmem:[#allocation2 + $0x20] sm:$0xf] %v547_v37 }
  0x95   :  { %v1368_v6 = vld [vmem:[#allocation2 + $0x3c] sm:$0xf0]  ;;  %v1672_v13 = vld [vmem:[#allocation2 + $0x40] sm:$0xf0] }
  0x96   :  { %v1371_v56 = vor.u32 %v1667_v42, %v1368_v6 }
  0x98   :  { %1289 = vmatmul.bf16.vlgmr.msrb.gmra.mxu3 %v1371_v56 }
  0x9b   :  { %v1374_v0 = vld [vmem:[#allocation2 + $0x20] sm:$0xf] }
  0x9c   :  { %v1375_v21 = vor.u32 %v1672_v13, %v1374_v0 }
  0x9e   :  { %1303 = vmatmul.bf16.vlgmr.msra.gmra.mxu0 %v1375_v21 }
  0xc0   :  { %v1192_v27 = vpop.f32.mrf.mxu0 }
  0xc8   :  { %v1194_v14 = vpop.f32.mrf.mxu0 }
  0xdc   :  { %v1220_v38 = vpop.f32.mrf.mxu2 }
  0xe2   :  { %v1206_v29 = vpop.f32.mrf.mxu1 }
  0xe3   :  { %v1207_v18 = vadd.f32 %v1206_v29, %v1192_v27 }
  0xe4   :  { %v1222_v45 = vpop.f32.mrf.mxu2 }
  0xe5   :  { %v1221_v28 = vadd.f32 %v1220_v38, %v1207_v18 }
  0xea   :  { %v1208_v31 = vpop.f32.mrf.mxu1 }
  0xeb   :  { %v1209_v16 = vadd.f32 %v1208_v31, %v1194_v14 }
  0xed   :  { %v1223_v41 = vadd.f32 %v1222_v45, %v1209_v16 }
  0xf1   :  { %v1234_v46 = vpop.f32.mrf.mxu3 }
  0xf2   :  { %v1235_v62 = vadd.f32 %v1234_v46, %v1221_v28 }
  0xf4   :  { %v1248_v19 = vpop.f32.mrf.mxu0 }
  0xf5   :  { %v1249_v32 = vadd.f32 %v1248_v19, %v1235_v62 }
  0xf9   :  { %v1236_v8 = vpop.f32.mrf.mxu3 }
  0xfa   :  { %v1237_v57 = vadd.f32 %v1236_v8, %v1223_v41 }
  0xfc   :  { %v1250_v4 = vpop.f32.mrf.mxu0 }
  0xfd   :  { %v1251_v54 = vadd.f32 %v1250_v4, %v1237_v57 }
 0x106   :  { %v1262_v51 = vpop.f32.mrf.mxu1 }
 0x107   :  { %v1263_v30 = vadd.f32 %v1262_v51, %v1249_v32 }
 0x10d   :  { %v1276_v24 = vpop.f32.mrf.mxu2 }
 0x10e   :  { %v1277_v50 = vadd.f32 %v1276_v24, %v1263_v30  ;;  %v1264_v26 = vpop.f32.mrf.mxu1 }
 0x10f   :  { %v1265_v33 = vadd.f32 %v1264_v26, %v1251_v54 }
 0x115   :  { %v1278_v10 = vpop.f32.mrf.mxu2 }
 0x116   :  { %v1279_v35 = vadd.f32 %v1278_v10, %v1265_v33 }
 0x11b   :  { %v1290_v39 = vpop.f32.mrf.mxu3  ;;  %v1304_v25 = vpop.f32.mrf.mxu0 }
 0x11c   :  { %v1291_v53 = vadd.f32 %v1290_v39, %v1277_v50 }
 0x11e   :  { %v1305_v55 = vadd.f32 %v1304_v25, %v1291_v53 }
 0x120   :  { %1309 = vst [vmem:[%s2498_s3] sm:$0xff] %v1305_v55 }
 0x123   :  { %v1292_v59 = vpop.f32.mrf.mxu3  ;;  %v1306_v48 = vpop.f32.mrf.mxu0 }
 0x124   :  { %v1293_v34 = vadd.f32 %v1292_v59, %v1279_v35 }
 0x126   :  { %v1307_v15 = vadd.f32 %v1306_v48, %v1293_v34 }
 0x128   :  { %1310 = vst [vmem:[%s2498_s3 + $0x8] sm:$0xff] %v1307_v15 }
 0x129   :  { %1315 = vsyncpa [#allocation4], 1 }

</bundles_post_ra>
